<compile_context>
chip_gen: v7x
topology: tpu7x:2x2x1
jax: 0.10.0
libtpu: 0.0.40
codegen_flags: <defaults>
</compile_context>

<pallas_src>
import jax
import jax.numpy as jnp
from jax.experimental import pallas as pl
from jax.experimental.pallas import tpu as pltpu


def attention_kernel(lens_ref, mem_ref, aw_ref, pq_ref, wm_ref, wcomb_ref, v_ref,
                     ctx_ref, w_ref, m_sc, l_sc, acc_sc):
    b = pl.program_id(0)
    t = pl.program_id(1)
    n_t = pl.num_programs(1)
    _, E, t_tile = mem_ref.shape                 # memory tile: (1, E, t_tile)
    th = aw_ref.shape[-1]                        # t_tile + (K - 1)
    K = th - t_tile + 1                          # odd kernel_size (Tacotron2)

    # ---- init online-softmax state at the first time tile of this batch row ----
    @pl.when(t == 0)
    def _():
        m_sc[...] = jnp.full(m_sc.shape, -1e30, jnp.float32)   # finite floor
        l_sc[...] = jnp.zeros(l_sc.shape, jnp.float32)
        acc_sc[...] = jnp.zeros(acc_sc.shape, jnp.float32)

    # bf16 stream -> f32 compute (v5e-safe; v6e/v7x could feed bf16 to the MXU)
    mem = mem_ref[0].astype(jnp.float32)                       # (E, t_tile)

    # memory_layer folded in: pmem = Wm @ memory_tile on the MXU
    pmem = jnp.dot(wm_ref[...], mem,
                   preferred_element_type=jnp.float32)         # (A, t_tile)

    # location conv (2->F) + location dense (F->A) folded into one matmul;
    # the K shifted views come from static lane slices of the haloed aw tile.
    parts = [aw_ref[0, 0, :, dk:dk + t_tile] for dk in range(K)]   # K x (2, t_tile)
    patches = jnp.concatenate(parts, axis=0)                   # (2K, t_tile)
    proc = jnp.dot(wcomb_ref[...], patches,
                   preferred_element_type=jnp.float32)         # (A, t_tile)

    # energies = v . tanh(pq + proc_attn + processed_memory), lane-dense over time
    s = jnp.tanh(pq_ref[0] + pmem + proc)                      # (A, t_tile)
    energies = jnp.sum(s * v_ref[...], axis=0, keepdims=True)  # (1, t_tile)

    # mask built in-kernel from the scalar-prefetched length (no (B,T) stream)
    t0 = pl.multiple_of(t * t_tile, t_tile)
    pos = t0 + jax.lax.broadcasted_iota(jnp.int32, (1, t_tile), 1)
    masked = jnp.where(pos >= lens_ref[b], -jnp.inf, energies)  # (1, t_tile)

    # ---- online softmax over time tiles ----
    m_prev = m_sc[...]                                          # (1, 1)
    m_new = jnp.maximum(m_prev, jnp.max(masked, axis=1, keepdims=True))
    alpha = jnp.exp(m_prev - m_new)
    p = jnp.exp(masked - m_new)                                 # (1, t_tile)
    l_sc[...] = alpha * l_sc[...] + jnp.sum(p, axis=1, keepdims=True)
    acc_sc[...] = alpha * acc_sc[...] + jnp.sum(mem * p, axis=1, keepdims=True)  # (E, 1)
    m_sc[...] = m_new

    # stash raw masked energies in the resident (1, 1, T) weights block
    w_ref[0, :, pl.ds(t0, t_tile)] = masked

    # ---- finalize on last time tile ----
    @pl.when(t == n_t - 1)
    def _():
        inv_l = 1.0 / l_sc[...]
        ctx_ref[0] = acc_sc[...] * inv_l                         # (E, 1)
        w_ref[0] = jnp.exp(w_ref[0] - m_sc[...]) * inv_l


def tacotron2_attention(query, memory, attention_weights_cat, mask,
                        wq_t, wm_t, wconv, wloc_t, v_col, kernel_size,
                        t_tile=512):
    """Forward pass of Tacotron2 Attention.

    processed_memory (== memory @ wm_t, computed by memory_layer in the torch
    module) is recomputed in-kernel from the streamed memory tile, so wm_t is
    taken instead of processed_memory (removes a full (B,T,A) HBM stream).
    mask is assumed to be the standard Tacotron2 suffix padding mask.
    """
    B, T, E = memory.shape
    A = wq_t.shape[1]
    K = kernel_size
    assert K % 2 == 1, "Tacotron2 uses an odd location kernel size"
    pad = (K - 1) // 2
    assert T % t_tile == 0, "wrapper assumes T divisible by t_tile"
    n_t = T // t_tile

    # query_layer hoisted (one tiny constant block instead of a t==0 branch)
    pq3 = (query @ wq_t).reshape(B, A, 1)
    # memory_layer weight, (A, E) for the in-kernel (A,E)@(E,t_tile) matmul
    wm = wm_t.T
    # location conv (K,2,F) and location dense (F,A) folded into one (A, 2K)
    wcomb = jnp.einsum('kcf,fa->akc', wconv, wloc_t).reshape(A, 2 * K)
    v2 = v_col.reshape(A, 1)

    # lane-dense (time-minor) bf16 memory stream.  In a real decoder loop this
    # transpose/cast is done once per utterance and reused every step.
    mem_bet = jnp.transpose(memory, (0, 2, 1)).astype(jnp.bfloat16)   # (B, E, T)

    # per-tile haloed attention-weight slabs (no K-fold im2col inflation)
    aw_pad = jnp.pad(attention_weights_cat, ((0, 0), (0, 0), (pad, pad)))
    th = t_tile + 2 * pad
    aw_tiles = jnp.stack(
        [aw_pad[:, :, i * t_tile:i * t_tile + th] for i in range(n_t)], axis=0)

    # mask -> lengths (suffix padding mask), scalar-prefetched into SMEM
    lengths = jnp.sum(jnp.logical_not(mask), axis=1).astype(jnp.int32)

    grid_spec = pltpu.PrefetchScalarGridSpec(
        num_scalar_prefetch=1,
        grid=(B, n_t),
        in_specs=[
            pl.BlockSpec((1, E, t_tile), lambda b, t, lens: (b, 0, t)),    # memory (bf16)
            pl.BlockSpec((1, 1, 2, th), lambda b, t, lens: (t, b, 0, 0)),  # aw halo tiles
            pl.BlockSpec((1, A, 1), lambda b, t, lens: (b, 0, 0)),         # processed_query
            pl.BlockSpec((A, E), lambda b, t, lens: (0, 0)),               # memory_layer W
            pl.BlockSpec((A, 2 * K), lambda b, t, lens: (0, 0)),           # folded conv+dense W
            pl.BlockSpec((A, 1), lambda b, t, lens: (0, 0)),               # v
        ],
        out_specs=(
            pl.BlockSpec((1, E, 1), lambda b, t, lens: (b, 0, 0)),         # context
            pl.BlockSpec((1, 1, T), lambda b, t, lens: (b, 0, 0)),         # weights (resident)
        ),
        scratch_shapes=[
            pltpu.VMEM((1, 1), jnp.float32),   # running max
            pltpu.VMEM((1, 1), jnp.float32),   # running denom
            pltpu.VMEM((E, 1), jnp.float32),   # context accumulator
        ],
    )

    ctx3, w3 = pl.pallas_call(
        attention_kernel,
        out_shape=(jax.ShapeDtypeStruct((B, E, 1), jnp.float32),
                   jax.ShapeDtypeStruct((B, 1, T), jnp.float32)),
        grid_spec=grid_spec,
        compiler_params=pltpu.CompilerParams(
            dimension_semantics=("parallel", "arbitrary"),
            vmem_limit_bytes=64 * 1024 * 1024),
    )(lengths, mem_bet, aw_tiles, pq3, wm, wcomb, v2)

    return ctx3[:, :, 0], w3[:, 0, :]


def reference(query, memory, attention_weights_cat, mask,
              wq_t, wm_t, wconv, wloc_t, v_col, kernel_size):
    # Reference uses the same bf16-quantized memory as the kernel stream.
    mem_q = memory.astype(jnp.bfloat16).astype(jnp.float32)
    processed_memory = jnp.einsum('bte,ea->bta', mem_q, wm_t)
    pad = (kernel_size - 1) // 2
    aw_pad = jnp.pad(attention_weights_cat, ((0, 0), (0, 0), (pad, pad)))
    B, _, T = attention_weights_cat.shape
    F = wconv.shape[2]
    conv = jnp.zeros((B, T, F), jnp.float32)
    for dk in range(kernel_size):
        for c in range(2):
            conv = conv + aw_pad[:, c, dk:dk + T][:, :, None] * wconv[dk, c, :]
    proc_attn = jnp.einsum('btf,fa->bta', conv, wloc_t)
    pq = query @ wq_t
    s = jnp.tanh(pq[:, None, :] + proc_attn + processed_memory)
    energies = (s @ v_col)[:, :, 0]
    energies = jnp.where(mask, -jnp.inf, energies)
    w = jax.nn.softmax(energies, axis=1)
    ctx = jnp.einsum('bt,bte->be', w, mem_q)
    return ctx, w


if __name__ == "__main__":
    B = 2
    T = 1024                    # max_time (two 512-wide time tiles)
    attention_rnn_dim = 32
    embedding_dim = 16
    attention_dim = 32
    n_filters = 4
    kernel_size = 3
    T_TILE = 512

    key = jax.random.PRNGKey(0)
    ks = jax.random.split(key, 8)

    # Deterministic synthetic parameters (pre-transposed for the kernel).
    wq_t = 0.1 * jax.random.normal(ks[0], (attention_rnn_dim, attention_dim), jnp.float32)
    wm_t = 0.1 * jax.random.normal(ks[1], (embedding_dim, attention_dim), jnp.float32)
    wconv = 0.1 * jax.random.normal(ks[2], (kernel_size, 2, n_filters), jnp.float32)
    wloc_t = 0.1 * jax.random.normal(ks[3], (n_filters, attention_dim), jnp.float32)
    v_col = 0.1 * jax.random.normal(ks[4], (attention_dim, 1), jnp.float32)

    # Inputs.
    query = jax.random.normal(ks[5], (B, attention_rnn_dim), jnp.float32)
    memory = jax.random.normal(ks[6], (B, T, embedding_dim), jnp.float32)
    aw_cat = jax.nn.softmax(
        jax.random.normal(ks[7], (B, 2, T), jnp.float32), axis=-1)
    lengths = jnp.array([T, T - 157], jnp.int32)
    mask = jnp.arange(T)[None, :] >= lengths[:, None]     # (B, T) bool, True = padded

    ctx, w = tacotron2_attention(query, memory, aw_cat, mask,
                                 wq_t, wm_t, wconv, wloc_t, v_col, kernel_size,
                                 t_tile=T_TILE)
    ctx = jax.block_until_ready(ctx)
    w = jax.block_until_ready(w)

    ctx_ref, w_ref = reference(query, memory, aw_cat, mask,
                               wq_t, wm_t, wconv, wloc_t, v_col, kernel_size)
    assert ctx.shape == (B, embedding_dim) and w.shape == (B, T)
    assert jnp.allclose(ctx, ctx_ref, atol=1e-4, rtol=1e-4)
    assert jnp.allclose(w, w_ref, atol=1e-4, rtol=1e-4)
    print("KERNEL_OK")
</pallas_src>

<mosaic_0001>
module attributes {stable_mosaic.version = 11 : i64} {
  func.func @attention_kernel(%arg0: i32, %arg1: i32, %arg2: memref<2xi32, #tpu.memory_space<smem>>, %arg3: memref<1x16x512xbf16, #tpu.memory_space<vmem>>, %arg4: memref<1x1x2x514xf32, #tpu.memory_space<vmem>>, %arg5: memref<1x32x1xf32, #tpu.memory_space<vmem>>, %arg6: memref<32x16xf32, #tpu.memory_space<vmem>>, %arg7: memref<32x6xf32, #tpu.memory_space<vmem>>, %arg8: memref<32x1xf32, #tpu.memory_space<vmem>>, %arg9: memref<1x16x1xf32, #tpu.memory_space<vmem>>, %arg10: memref<1x1x1024xf32, #tpu.memory_space<vmem>>, %arg11: memref<1x1xf32, #tpu.memory_space<vmem>>, %arg12: memref<1x1xf32, #tpu.memory_space<vmem>>, %arg13: memref<16x1xf32, #tpu.memory_space<vmem>>) attributes {dimension_semantics = [#tpu.dimension_semantics<parallel>, #tpu.dimension_semantics<arbitrary>], iteration_bounds = array<i64: 2, 2>, scalar_prefetch = 1 : i64, scratch_operands = 3 : i64, tpu.core_type = #tpu.core_type<tc>, window_params = [{transform_indices = @transform_0, window_bounds = array<i64: 1, 16, 512>}, {transform_indices = @transform_1, window_bounds = array<i64: 1, 1, 2, 514>}, {transform_indices = @transform_2, window_bounds = array<i64: 1, 32, 1>}, {pipeline_mode = #tpu.pipeline_mode<synchronous>, transform_indices = @transform_3, window_bounds = array<i64: 32, 16>}, {pipeline_mode = #tpu.pipeline_mode<synchronous>, transform_indices = @transform_4, window_bounds = array<i64: 32, 6>}, {pipeline_mode = #tpu.pipeline_mode<synchronous>, transform_indices = @transform_5, window_bounds = array<i64: 32, 1>}, {transform_indices = @transform_6, window_bounds = array<i64: 1, 16, 1>}, {transform_indices = @transform_7, window_bounds = array<i64: 1, 1, 1024>}]} {
    %c0_i32 = arith.constant 0 : i32
    %0 = arith.cmpi eq, %arg1, %c0_i32 : i32
    %1 = arith.extui %0 : i1 to i32
    %c0_i32_0 = arith.constant 0 : i32
    %2 = arith.cmpi ne, %1, %c0_i32_0 : i32
    scf.if %2 {
      %cst_43 = arith.constant -1.000000e+30 : f32
      %71 = vector.broadcast %cst_43 : f32 to vector<1x1xf32>
      %c0_44 = arith.constant 0 : index
      %c0_45 = arith.constant 0 : index
      %72 = vector.load %arg11[%c0_44, %c0_45] : memref<1x1xf32, #tpu.memory_space<vmem>>, vector<1x1xf32>
      tpu.vector_store %arg11[%c0_44, %c0_45], %71 {strides = array<i32>} : memref<1x1xf32, #tpu.memory_space<vmem>>, vector<1x1xf32>,
      %cst_46 = arith.constant 0.000000e+00 : f32
      %73 = vector.broadcast %cst_46 : f32 to vector<1x1xf32>
      %c0_47 = arith.constant 0 : index
      %c0_48 = arith.constant 0 : index
      %74 = vector.load %arg12[%c0_47, %c0_48] : memref<1x1xf32, #tpu.memory_space<vmem>>, vector<1x1xf32>
      tpu.vector_store %arg12[%c0_47, %c0_48], %73 {strides = array<i32>} : memref<1x1xf32, #tpu.memory_space<vmem>>, vector<1x1xf32>,
      %cst_49 = arith.constant 0.000000e+00 : f32
      %75 = vector.broadcast %cst_49 : f32 to vector<16x1xf32>
      %c0_50 = arith.constant 0 : index
      %c0_51 = arith.constant 0 : index
      %76 = vector.load %arg13[%c0_50, %c0_51] : memref<16x1xf32, #tpu.memory_space<vmem>>, vector<16x1xf32>
      tpu.vector_store %arg13[%c0_50, %c0_51], %75 {strides = array<i32>} : memref<16x1xf32, #tpu.memory_space<vmem>>, vector<16x1xf32>,
    } else {
    }
    %c0 = arith.constant 0 : index
    %c0_1 = arith.constant 0 : index
    %c0_2 = arith.constant 0 : index
    %3 = vector.load %arg3[%c0, %c0_1, %c0_2] : memref<1x16x512xbf16, #tpu.memory_space<vmem>>, vector<1x16x512xbf16>
    %4 = vector.shape_cast %3 : vector<1x16x512xbf16> to vector<16x512xbf16>
    %5 = arith.extf %4 : vector<16x512xbf16> to vector<16x512xf32>
    %c0_3 = arith.constant 0 : index
    %c0_4 = arith.constant 0 : index
    %6 = vector.load %arg6[%c0_3, %c0_4] : memref<32x16xf32, #tpu.memory_space<vmem>>, vector<32x16xf32>
    %cst = arith.constant dense<0.000000e+00> : vector<32x512xf32>
    %7 = tpu.matmul %6, %5, %cst {dimension_numbers = #tpu.dot_dimension_numbers<[1], [0], [0], [1], [0, 0, 1, 1], [], []>} : vector<32x16xf32>, vector<16x512xf32>, vector<32x512xf32> -> vector<32x512xf32>
    %c0_5 = arith.constant 0 : index
    %c0_6 = arith.constant 0 : index
    %c0_7 = arith.constant 0 : index
    %c0_8 = arith.constant 0 : index
    %8 = vector.load %arg4[%c0_5, %c0_6, %c0_7, %c0_8] : memref<1x1x2x514xf32, #tpu.memory_space<vmem>>, vector<1x1x2x512xf32>
    %9 = vector.shape_cast %8 : vector<1x1x2x512xf32> to vector<2x512xf32>
    %c0_9 = arith.constant 0 : index
    %c0_10 = arith.constant 0 : index
    %c0_11 = arith.constant 0 : index
    %c1 = arith.constant 1 : index
    %10 = vector.load %arg4[%c0_9, %c0_10, %c0_11, %c1] : memref<1x1x2x514xf32, #tpu.memory_space<vmem>>, vector<1x1x2x512xf32>
    %11 = vector.shape_cast %10 : vector<1x1x2x512xf32> to vector<2x512xf32>
    %c0_12 = arith.constant 0 : index
    %c0_13 = arith.constant 0 : index
    %c0_14 = arith.constant 0 : index
    %c2 = arith.constant 2 : index
    %12 = vector.load %arg4[%c0_12, %c0_13, %c0_14, %c2] : memref<1x1x2x514xf32, #tpu.memory_space<vmem>>, vector<1x1x2x512xf32>
    %13 = vector.shape_cast %12 : vector<1x1x2x512xf32> to vector<2x512xf32>
    %14 = tpu.concatenate %9, %11, %13 in 0 : vector<2x512xf32>, vector<2x512xf32>, vector<2x512xf32> -> vector<6x512xf32>
    %c0_15 = arith.constant 0 : index
    %c0_16 = arith.constant 0 : index
    %15 = vector.load %arg7[%c0_15, %c0_16] : memref<32x6xf32, #tpu.memory_space<vmem>>, vector<32x6xf32>
    %cst_17 = arith.constant dense<0.000000e+00> : vector<32x512xf32>
    %16 = tpu.matmul %15, %14, %cst_17 {dimension_numbers = #tpu.dot_dimension_numbers<[1], [0], [0], [1], [0, 0, 1, 1], [], []>} : vector<32x6xf32>, vector<6x512xf32>, vector<32x512xf32> -> vector<32x512xf32>
    %c0_18 = arith.constant 0 : index
    %c0_19 = arith.constant 0 : index
    %c0_20 = arith.constant 0 : index
    %17 = vector.load %arg5[%c0_18, %c0_19, %c0_20] : memref<1x32x1xf32, #tpu.memory_space<vmem>>, vector<1x32x1xf32>
    %18 = vector.shape_cast %17 : vector<1x32x1xf32> to vector<32x1xf32>
    %19 = vector.broadcast %18 : vector<32x1xf32> to vector<32x512xf32>
    %20 = arith.addf %19, %7 : vector<32x512xf32>
    %21 = arith.addf %20, %16 : vector<32x512xf32>
    %22 = math.tanh %21 : vector<32x512xf32>
    %c0_21 = arith.constant 0 : index
    %c0_22 = arith.constant 0 : index
    %23 = vector.load %arg8[%c0_21, %c0_22] : memref<32x1xf32, #tpu.memory_space<vmem>>, vector<32x1xf32>
    %24 = vector.broadcast %23 : vector<32x1xf32> to vector<32x512xf32>
    %25 = arith.mulf %22, %24 : vector<32x512xf32>
    %cst_23 = arith.constant dense<0.000000e+00> : vector<512xf32>
    %26 = vector.multi_reduction <add>, %25, %cst_23 [0] : vector<32x512xf32> to vector<512xf32>
    %27 = vector.shape_cast %26 : vector<512xf32> to vector<1x512xf32>
    %c512_i32 = arith.constant 512 : i32
    %28 = arith.muli %arg1, %c512_i32 : i32
    %29 = tpu.assume_multiple %28, 512 : i32
    %30 = tpu.iota {dimensions = array<i32: 1>} : vector<1x512xi32>
    %31 = vector.broadcast %29 : i32 to vector<1x512xi32>
    %32 = arith.addi %31, %30 : vector<1x512xi32>
    %33 = arith.index_cast %arg0 : i32 to index
    %34 = memref.load %arg2[%33] : memref<2xi32, #tpu.memory_space<smem>>
    %35 = vector.broadcast %34 : i32 to vector<1x512xi32>
    %36 = arith.cmpi sge, %32, %35 : vector<1x512xi32>
    %cst_24 = arith.constant 0xFF800000 : f32
    %37 = vector.broadcast %cst_24 : f32 to vector<1x512xf32>
    %38 = arith.select %36, %37, %27 : vector<1x512xi1>, vector<1x512xf32>
    %c0_25 = arith.constant 0 : index
    %c0_26 = arith.constant 0 : index
    %39 = vector.load %arg11[%c0_25, %c0_26] : memref<1x1xf32, #tpu.memory_space<vmem>>, vector<1x1xf32>
    %cst_27 = arith.constant dense<0xFF800000> : vector<1xf32>
    %40 = vector.multi_reduction <maximumf>, %38, %cst_27 [1] : vector<1x512xf32> to vector<1xf32>
    %41 = vector.shape_cast %40 : vector<1xf32> to vector<1x1xf32>
    %42 = arith.maximumf %39, %41 : vector<1x1xf32>
    %43 = arith.subf %39, %42 : vector<1x1xf32>
    %44 = math.exp %43 : vector<1x1xf32>
    %45 = vector.broadcast %42 : vector<1x1xf32> to vector<1x512xf32>
    %46 = arith.subf %38, %45 : vector<1x512xf32>
    %47 = math.exp %46 : vector<1x512xf32>
    %c0_28 = arith.constant 0 : index
    %c0_29 = arith.constant 0 : index
    %48 = vector.load %arg12[%c0_28, %c0_29] : memref<1x1xf32, #tpu.memory_space<vmem>>, vector<1x1xf32>
    %49 = arith.mulf %44, %48 : vector<1x1xf32>
    %cst_30 = arith.constant dense<0.000000e+00> : vector<1xf32>
    %50 = vector.multi_reduction <add>, %47, %cst_30 [1] : vector<1x512xf32> to vector<1xf32>
    %51 = vector.shape_cast %50 : vector<1xf32> to vector<1x1xf32>
    %52 = arith.addf %49, %51 : vector<1x1xf32>
    %c0_31 = arith.constant 0 : index
    %c0_32 = arith.constant 0 : index
    %53 = vector.load %arg12[%c0_31, %c0_32] : memref<1x1xf32, #tpu.memory_space<vmem>>, vector<1x1xf32>
    tpu.vector_store %arg12[%c0_31, %c0_32], %52 {strides = array<i32>} : memref<1x1xf32, #tpu.memory_space<vmem>>, vector<1x1xf32>,
    %c0_33 = arith.constant 0 : index
    %c0_34 = arith.constant 0 : index
    %54 = vector.load %arg13[%c0_33, %c0_34] : memref<16x1xf32, #tpu.memory_space<vmem>>, vector<16x1xf32>
    %55 = vector.broadcast %44 : vector<1x1xf32> to vector<16x1xf32>
    %56 = arith.mulf %55, %54 : vector<16x1xf32>
    %57 = vector.broadcast %47 : vector<1x512xf32> to vector<16x512xf32>
    %58 = arith.mulf %5, %57 : vector<16x512xf32>
    %cst_35 = arith.constant dense<0.000000e+00> : vector<16xf32>
    %59 = vector.multi_reduction <add>, %58, %cst_35 [1] : vector<16x512xf32> to vector<16xf32>
    %60 = vector.shape_cast %59 : vector<16xf32> to vector<16x1xf32>
    %61 = arith.addf %56, %60 : vector<16x1xf32>
    %c0_36 = arith.constant 0 : index
    %c0_37 = arith.constant 0 : index
    %62 = vector.load %arg13[%c0_36, %c0_37] : memref<16x1xf32, #tpu.memory_space<vmem>>, vector<16x1xf32>
    tpu.vector_store %arg13[%c0_36, %c0_37], %61 {strides = array<i32>} : memref<16x1xf32, #tpu.memory_space<vmem>>, vector<16x1xf32>,
    %c0_38 = arith.constant 0 : index
    %c0_39 = arith.constant 0 : index
    %63 = vector.load %arg11[%c0_38, %c0_39] : memref<1x1xf32, #tpu.memory_space<vmem>>, vector<1x1xf32>
    tpu.vector_store %arg11[%c0_38, %c0_39], %42 {strides = array<i32>} : memref<1x1xf32, #tpu.memory_space<vmem>>, vector<1x1xf32>,
    %c0_40 = arith.constant 0 : index
    %c0_41 = arith.constant 0 : index
    %64 = arith.index_cast %29 : i32 to index
    %65 = vector.load %arg10[%c0_40, %c0_41, %64] : memref<1x1x1024xf32, #tpu.memory_space<vmem>>, vector<1x1x512xf32>
    %66 = vector.shape_cast %65 : vector<1x1x512xf32> to vector<1x512xf32>
    %67 = vector.shape_cast %38 : vector<1x512xf32> to vector<1x1x512xf32>
    tpu.vector_store %arg10[%c0_40, %c0_41, %64], %67 {strides = array<i32>} : memref<1x1x1024xf32, #tpu.memory_space<vmem>>, vector<1x1x512xf32>,
    %c1_i32 = arith.constant 1 : i32
    %68 = arith.cmpi eq, %arg1, %c1_i32 : i32
    %69 = arith.extui %68 : i1 to i32
    %c0_i32_42 = arith.constant 0 : i32
    %70 = arith.cmpi ne, %69, %c0_i32_42 : i32
    scf.if %70 {
      %c0_43 = arith.constant 0 : index
      %c0_44 = arith.constant 0 : index
      %71 = vector.load %arg12[%c0_43, %c0_44] : memref<1x1xf32, #tpu.memory_space<vmem>>, vector<1x1xf32>
      %cst_45 = arith.constant 1.000000e+00 : f32
      %72 = vector.broadcast %cst_45 : f32 to vector<1x1xf32>
      %73 = arith.divf %72, %71 : vector<1x1xf32>
      %c0_46 = arith.constant 0 : index
      %c0_47 = arith.constant 0 : index
      %74 = vector.load %arg13[%c0_46, %c0_47] : memref<16x1xf32, #tpu.memory_space<vmem>>, vector<16x1xf32>
      %75 = vector.broadcast %73 : vector<1x1xf32> to vector<16x1xf32>
      %76 = arith.mulf %74, %75 : vector<16x1xf32>
      %c0_48 = arith.constant 0 : index
      %c0_49 = arith.constant 0 : index
      %c0_50 = arith.constant 0 : index
      %77 = vector.load %arg9[%c0_48, %c0_49, %c0_50] : memref<1x16x1xf32, #tpu.memory_space<vmem>>, vector<1x16x1xf32>
      %78 = vector.shape_cast %77 : vector<1x16x1xf32> to vector<16x1xf32>
      %79 = vector.shape_cast %76 : vector<16x1xf32> to vector<1x16x1xf32>
      tpu.vector_store %arg9[%c0_48, %c0_49, %c0_50], %79 {strides = array<i32>} : memref<1x16x1xf32, #tpu.memory_space<vmem>>, vector<1x16x1xf32>,
      %c0_51 = arith.constant 0 : index
      %c0_52 = arith.constant 0 : index
      %c0_53 = arith.constant 0 : index
      %80 = vector.load %arg10[%c0_51, %c0_52, %c0_53] : memref<1x1x1024xf32, #tpu.memory_space<vmem>>, vector<1x1x1024xf32>
      %81 = vector.shape_cast %80 : vector<1x1x1024xf32> to vector<1x1024xf32>
      %c0_54 = arith.constant 0 : index
      %c0_55 = arith.constant 0 : index
      %82 = vector.load %arg11[%c0_54, %c0_55] : memref<1x1xf32, #tpu.memory_space<vmem>>, vector<1x1xf32>
      %83 = vector.broadcast %82 : vector<1x1xf32> to vector<1x1024xf32>
      %84 = arith.subf %81, %83 : vector<1x1024xf32>
      %85 = math.exp %84 : vector<1x1024xf32>
      %86 = vector.broadcast %73 : vector<1x1xf32> to vector<1x1024xf32>
      %87 = arith.mulf %85, %86 : vector<1x1024xf32>
      %c0_56 = arith.constant 0 : index
      %c0_57 = arith.constant 0 : index
      %c0_58 = arith.constant 0 : index
      %88 = vector.load %arg10[%c0_56, %c0_57, %c0_58] : memref<1x1x1024xf32, #tpu.memory_space<vmem>>, vector<1x1x1024xf32>
      %89 = vector.shape_cast %88 : vector<1x1x1024xf32> to vector<1x1024xf32>
      %90 = vector.shape_cast %87 : vector<1x1024xf32> to vector<1x1x1024xf32>
      tpu.vector_store %arg10[%c0_56, %c0_57, %c0_58], %90 {strides = array<i32>} : memref<1x1x1024xf32, #tpu.memory_space<vmem>>, vector<1x1x1024xf32>,
    } else {
    }
    return
  }
  func.func @transform_0(%arg0: i32, %arg1: i32, %arg2: memref<2xi32, #tpu.memory_space<smem>>) -> (i32, i32, i32) {
    %c0_i32 = arith.constant 0 : i32
    %c0_i32_0 = arith.constant 0 : i32
    return %arg0, %c0_i32, %arg1 : i32, i32, i32
  }
  func.func @transform_1(%arg0: i32, %arg1: i32, %arg2: memref<2xi32, #tpu.memory_space<smem>>) -> (i32, i32, i32, i32) {
    %c0_i32 = arith.constant 0 : i32
    %c0_i32_0 = arith.constant 0 : i32
    %c0_i32_1 = arith.constant 0 : i32
    return %arg1, %arg0, %c0_i32, %c0_i32_0 : i32, i32, i32, i32
  }
  func.func @transform_2(%arg0: i32, %arg1: i32, %arg2: memref<2xi32, #tpu.memory_space<smem>>) -> (i32, i32, i32) {
    %c0_i32 = arith.constant 0 : i32
    %c0_i32_0 = arith.constant 0 : i32
    %c0_i32_1 = arith.constant 0 : i32
    return %arg0, %c0_i32, %c0_i32_0 : i32, i32, i32
  }
  func.func @transform_3(%arg0: i32, %arg1: i32, %arg2: memref<2xi32, #tpu.memory_space<smem>>) -> (i32, i32) {
    %c0_i32 = arith.constant 0 : i32
    %c0_i32_0 = arith.constant 0 : i32
    %c0_i32_1 = arith.constant 0 : i32
    return %c0_i32, %c0_i32_0 : i32, i32
  }
  func.func @transform_4(%arg0: i32, %arg1: i32, %arg2: memref<2xi32, #tpu.memory_space<smem>>) -> (i32, i32) {
    %c0_i32 = arith.constant 0 : i32
    %c0_i32_0 = arith.constant 0 : i32
    %c0_i32_1 = arith.constant 0 : i32
    return %c0_i32, %c0_i32_0 : i32, i32
  }
  func.func @transform_5(%arg0: i32, %arg1: i32, %arg2: memref<2xi32, #tpu.memory_space<smem>>) -> (i32, i32) {
    %c0_i32 = arith.constant 0 : i32
    %c0_i32_0 = arith.constant 0 : i32
    %c0_i32_1 = arith.constant 0 : i32
    return %c0_i32, %c0_i32_0 : i32, i32
  }
  func.func @transform_6(%arg0: i32, %arg1: i32, %arg2: memref<2xi32, #tpu.memory_space<smem>>) -> (i32, i32, i32) {
    %c0_i32 = arith.constant 0 : i32
    %c0_i32_0 = arith.constant 0 : i32
    %c0_i32_1 = arith.constant 0 : i32
    return %arg0, %c0_i32, %c0_i32_0 : i32, i32, i32
  }
  func.func @transform_7(%arg0: i32, %arg1: i32, %arg2: memref<2xi32, #tpu.memory_space<smem>>) -> (i32, i32, i32) {
    %c0_i32 = arith.constant 0 : i32
    %c0_i32_0 = arith.constant 0 : i32
    %c0_i32_1 = arith.constant 0 : i32
    return %arg0, %c0_i32, %c0_i32_0 : i32, i32, i32
  }
}

</mosaic_0001>

<bundles_post_ra>
// kernel: tpu_custom_call.1
= control target key start
LH: loop header
LB: loop body
LE: loop exit
PB: predicated region body
PF: predicated region fallthrough
CT: control target
= control target key end

     0   :  { %s2910_s0 = inlined_call_operand.hbm [shape: s32[2], index: 0, kind: input, shape index: {}]   ;;  %s2911_s1 = inlined_call_operand.hbm [shape: bf16[2,16,1024], index: 1, kind: input, shape index: {}]   ;;  %s2912_s2 = inlined_call_operand.hbm [shape: f32[2,2,2,514], index: 2, kind: input, shape index: {}]   ;;  %s2913_s3 = inlined_call_operand.hbm [shape: f32[2,32,1], index: 3, kind: input, shape index: {}]   ;;  %s2914_s4 = inlined_call_operand.hbm [shape: f32[32,16], index: 4, kind: input, shape index: {}]   ;;  %s2915_s5 = inlined_call_operand.hbm [shape: f32[32,6], index: 5, kind: input, shape index: {}]   ;;  %s2916_s6 = inlined_call_operand.hbm [shape: f32[32,1], index: 6, kind: input, shape index: {}]   ;;  %s2917_s7 = inlined_call_operand.hbm [shape: f32[2,16,1], index: 7, kind: output, shape index: {0}]   ;;  %s2918_s8 = inlined_call_operand.hbm [shape: f32[2,1,1024], index: 8, kind: output, shape index: {1}]  }
   0x1   :  { %2952 = sst [smem:[#allocation43_spill]] %s2912_s2  ;;  %s1856_s29 = scalar_lea.hbm %s2910_s0, 16 }
   0x2   :  { %2953 = sst [smem:[#allocation44_spill]] %s2914_s4  ;;  %p1857_p0 = scmp.ne.s32.totalorder %s2910_s0, %s1856_s29 }
   0x3   :  { %2954 = sst [smem:[#allocation45_spill]] %s2917_s7  ;;  %p1860_p1 = scmp.lt.u32.totalorder %s1856_s29, %s2910_s0 }
   0x4   :  { %2955 = sst [smem:[#allocation46_spill]] %s2918_s8 }
   0x5   :  { %p1862_p2 = pnand %p1860_p1, %p1857_p0 }
   0x7   :  { %1865 = shalt.err (!%p1862_p2)  }
   0x8   :  { %s2214_s12 = smov [#allocation6]  }
   0x9   :  { %15 = dma.hbm_to_smem %s2910_s0, 16, %s2214_s12, [#allocation5] }
   0xa   :  { %2140 = dma.done.wait [#allocation5], 16 }
   0xb   :  { %2141 = vsyncadd [#allocation5], 4294967280 }
   0xc   :  { %17 = sfence }
   0xd   :  { %18 = vsyncpa [#allocation8], 0 }
   0xe   :  { %20 = vsyncpa [#allocation8 + $0x1], 0 }
   0xf   :  { %21 = vsyncpa [#allocation11], 0 }
  0x10   :  { %23 = vsyncpa [#allocation11 + $0x1], 0 }
  0x11   :  { %24 = vsyncpa [#allocation14], 0 }
  0x12   :  { %25 = vsyncpa [#allocation17], 0 }
  0x13   :  { %26 = vsyncpa [#allocation9], 0 }
  0x14   :  { %28 = vsyncpa [#allocation9 + $0x1], 0 }
  0x15   :  { %29 = vsyncpa [#allocation20], 0 }
  0x16   :  { %31 = vsyncpa [#allocation20 + $0x1], 0  ;;  %s2296_s15 = smov 0   ;;  %s2298_s16 = smov 0  }
  0x17   :  { %s2300_s17 = smov 0   ;;  %s2302_s0 = smov 0  }
  0x18   :  { %s2304_s18 = smov 0   ;;  %s2306_s19 = smov 0  }
  0x19   :  { %s2308_s20 = smov 0   ;;  %s2310_s21 = smov 0  }
  0x1a   :  { %s2312_s22 = smov 0   ;;  %s2314_s23 = smov 0  }
  0x1b   :  { %s2316_s24 = smov 0  }
  0x1c LB: > { %2956 = sst [smem:[#allocation29_spill]] %s2172_s15  ;;  %s2352_s25 = sadd.s32 4294967295, %s2212_s24   ;;  %s2212_s24 = sphi %s2316_s24, %s37_s24   ;;  %s2208_s23 = sphi %s2314_s23, %s3027_s23   ;;  %s2204_s22 = sphi %s2312_s22, %s3026_s22   ;;  %s2200_s21 = sphi %s2310_s21, %s3025_s21   ;;  %s2196_s20 = sphi %s2308_s20, %s3024_s20   ;;  %s2192_s19 = sphi %s2306_s19, %s3017_s19   ;;  %s2188_s18 = sphi %s2304_s18, %s3023_s18   ;;  %s2184_s0 = sphi %s2302_s0, %s3022_s0   ;;  %s2180_s17 = sphi %s2300_s17, %s3021_s17   ;;  %s2176_s16 = sphi %s2298_s16, %s3020_s16   ;;  %s2172_s15 = sphi %s2296_s15, %s3014_s15  }
  0x1d   : > { %2957 = sst [smem:[#allocation30_spill]] %s2176_s16  ;;  %s1531_s26 = sadd.s32 4294967294, %s2212_s24  }
  0x1e   : > { %2958 = sst [smem:[#allocation31_spill]] %s2192_s19  ;;  %p2921_p3 = scmp.eq.s32.totalorder %s2352_s25, 0 }
  0x1f   : > { %2959 = sst [smem:[#allocation32_spill]] %s2196_s20  ;;  %p125_p4 = scmp.ne.s32.totalorder %s2176_s16, %s2172_s15 }
  0x20   : > { %2960 = sst [smem:[#allocation33_spill]] %s2200_s21  ;;  %p218_p6 = scmp.eq.s32.totalorder %s1531_s26, 3 }
  0x21   : > { %2961 = sst [smem:[#allocation34_spill]] %s2212_s24  ;;  %p2361_p7 = por %p125_p4, %p2921_p3 }
  0x22   : > { %2962 = sst [smem:[#allocation35_spill]] %s2352_s25  ;;  %p1532_p8 = scmp.ge.s32.totalorder %s2212_s24, 1 }
  0x23   : > { %s2963_s27 = scalar_select %p2361_p7, 1, 0 }
  0x24   : > { %p2366_p9 = por %p218_p6, %p125_p4  ;;  %p251_p10 = scmp.lt.s32.totalorder %s2212_s24, 5 }
  0x25   : > { %2964 = sst [smem:[#allocation36_spill]] %s2963_s27  ;;  %s2215_s30 = smov [#allocation13]  }
  0x26   : > { %s2965_s28 = scalar_select %p2366_p9, 1, 0 }
  0x27   : > { %p2371_p11 = pnand %p1532_p8, %p251_p10  ;;  %s263_s9 = sshll.u32 %s2215_s30, 4  ;;  %s264_s9 = int_to_ptr.vmem [resolvable:$true] %s263_s9 }
  0x28   : > { %2966 = sst [smem:[#allocation37_spill]] %s2965_s28  ;;  %s2969_s4 = sld [smem:[#allocation44_spill]] }
  0x29   : > { %s2967_s29 = scalar_select %p2371_p11, 1, 0 }
  0x2a   : > { %p1657_p12 = pneg %p2371_p11 }
  0x2c   : > { %p2379_p13 = pnand %p1657_p12, %p2921_p3 }
  0x2e   : > { %s2968_s10 = scalar_select %p2379_p13, 1, 0 }
  0x2f   : > { %s1866_s13 = scalar_lea.hbm %s2969_s4, 512  ;;  %p2391_p1 = pneg %p2379_p13 }
  0x30   : > { %p1867_p0 = scmp.ne.s32.totalorder %s2969_s4, %s1866_s13  ;;  %p1873_p6 = scmp.lt.u32.totalorder %s1866_s13, %s2969_s4 }
  0x32   : > { %p1869_p2 = pnand %p2391_p1, %p1867_p0 }
  0x34   : > { %p1870_p4 = pneg %p1869_p2 }
  0x36   : > { %p1875_p8 = pnand %p1873_p6, %p1870_p4 }
  0x38   : > { %1878 = shalt.err (!%p1875_p8)
}
  0x39   : > { %s1879_s11 = scalar_lea.vmem %s264_s9, 512  ;;  %p1887_p3 = scmp.lt.s32.totalorder %s264_s9, %s264_s9 }
  0x3a   : > { %p1880_p10 = scmp.ne.s32.totalorder %s264_s9, %s1879_s11  ;;  %p1888_p9 = scmp.lt.s32.totalorder %s1879_s11, %s1879_s11 }
  0x3c   : > { %p1882_p12 = pnand %p1880_p10, %p2391_p1  ;;  %p1889_p7 = por %p1888_p9, %p1887_p3 }
  0x3e   : > { %p1883_p5 = pneg %p1882_p12 }
  0x40   : > { %p1890_p11 = pnand %p1889_p7, %p1883_p5 }
  0x42   : > { %1893 = shalt.err (!%p1890_p11)
}
  0x43   : > { %s2925_s12 = smov 128   ;;  %s2927_s15 = smov 8  }
  0x44   : > { %1660 = dma.hbm_to_vmem [thread:$0]  (!%p2379_p13), %s2969_s4, 512, %s264_s9, [#allocation14], %s2925_s12, %s2925_s12, %s2927_s15  }
  0x45   : > { %s46_s14 = sadd.s32 1, %s2204_s22  ;;  %s49_s26 = sadd.s32 1, %s2208_s23 }
  0x46   : > { %p47_p3 = scmp.ge.s32.totalorder %s46_s14, 2  ;;  %s58_s11 = sadd.s32 1, %s2192_s19 }
  0x47   : > { %p65_p5 = scmp.ne.s32.totalorder %s2192_s19, %s2188_s18  ;;  %p66_p7 = scmp.eq.s32.totalorder %s2212_s24, 0 }
  0x48   : > { %s3029_s14 = smov (%p47_p3, %s46_s14), 0  ;;  %s3031_s26 = smov (!%p47_p3, %s49_s26), %s2208_s23 }
  0x49   : > { %2971 = sst [smem:[#allocation38_spill]] %s3029_s14  ;;  %s54_s8 = ssub.s32 %s2204_s22, %s3029_s14 }
  0x4a   : > { %p51_p9 = scmp.ge.s32.totalorder %s3031_s26, 2  ;;  %p71_p11 = scmp.ne.s32.totalorder %s2188_s18, %s2184_s0 }
  0x4b   : > { %p2425_p0 = por %p66_p7, %p65_p5  ;;  %s112_s28 = sadd.s32 1, %s2180_s17 }
  0x4c   : > { %s3033_s26 = smov (%p51_p9, %s3031_s26), 0  ;;  %p2974_p2 = scmp.eq.s32.totalorder %s2352_s25, 0 }
  0x4d   : > { %2973 = sst [smem:[#allocation39_spill]] %s3033_s26  ;;  %p119_p6 = scmp.ne.s32.totalorder %s2180_s17, %s2176_s16 }
  0x4e   : > { %p2434_p4 = por %p2974_p2, %p71_p11  ;;  %s53_s12 = ssub.s32 %s2208_s23, %s3033_s26 }
  0x4f   : > { %p1687_p8 = scmp.lt.s32.totalorder %s2212_s24, 4  ;;  %s55_s0 = sor.u32 %s54_s8, %s53_s12 }
  0x50   : > { %s2975_s13 = scalar_select %p2434_p4, 1, 0 }
  0x51   : > { %p110_p10 = scmp.eq.s32.totalorder %s53_s12, 0  ;;  %p56_p12 = scmp.eq.s32.totalorder %s55_s0, 0 }
  0x52   : > { %p2445_p3 = por %p119_p6, %p66_p7  ;;  %p2979_p5 = scmp.eq.s32.totalorder %s2352_s25, 3 }
  0x53   : > { %s2450_s4 = scalar_select %p110_p10, %s2180_s17, %s112_s28  }
  0x54   : > { %s2453_s14 = scalar_select %p56_p12, %s2192_s19, %s58_s11  }
  0x55   : > { %2977 = sst [smem:[#allocation40_spill]] %s2450_s4  ;;  %p2457_p9 = por %p2979_p5, %p119_p6 }
  0x56   : > { %2978 = sst [smem:[#allocation41_spill]] %s2453_s14  ;;  %s2462_s8 = sand.u32 1, %s2192_s19  }
  0x57   : > { %s2980_s26 = scalar_select %p2457_p9, 1, 0 }
  0x58   : > { %s1537_s12 = sshll.u32 %s2462_s8, 5  ;;  %p2469_p7 = pnand %p1687_p8, %p2425_p0 }
  0x59   : > { %2981 = sst [smem:[#allocation42_spill]] %s2980_s26  ;;  %s307_s28 = scalar_lea.vmem [#allocation7], %s1537_s12 }
  0x5a   : > { %s2982_s0 = scalar_select %p2469_p7, 1, 0 }
  0x5b   : > { %s316_s4 = sshll.u32 %s307_s28, 4  ;;  %s326_s11 = sand.u32 1, %s2212_s24   ;;  %s2474_s4 = int_to_ptr.vmem [resolvable:$true] %s316_s4 }
  0x5c   : > { %s1631_s14 = smul.u32 10, %s2462_s8  ;;  %p2482_p11 = pnand %p1687_p8, %p2445_p3 }
  0x5d   : > { %s1632_s7 = smul.u32 5, %s2208_s23  ;;  %s2984_s2 = sld [smem:[#allocation43_spill]] }
  0x5e   : > { %s2983_s19 = scalar_select %p2482_p11, 1, 0 }
  0x5f   : > { %s1633_s9 = smul.u32 10, %s2204_s22  ;;  %s330_s26 = scalar_lea.vmem [#allocation10], %s1631_s14 }
  0x60   : > { %s340_s21 = sshll.u32 %s330_s26, 4  ;;  %s2218_s15 = smov [#allocation15]   ;;  %s2487_s21 = int_to_ptr.vmem [resolvable:$true] %s340_s21 }
  0x61   : > { %s336_s20 = sadd.s32 %s1633_s9, %s1632_s7  ;;  %s2494_s24 = sshll.u32 %s2218_s15, 4  ;;  %s277_s24 = int_to_ptr.vmem [resolvable:$true] %s2494_s24 }
  0x62   : > { %s1541_s12 = sshll.u32 %s336_s20, 5  ;;  %s2496_s25 = scalar_lea.sflag [#allocation11], %s326_s11 }
  0x63   : > { %s2492_s16 = scalar_lea.hbm %s2984_s2, %s1541_s12  ;;  %p2949_p2 = pneg %p2469_p7 }
  0x64   : > { %s1894_s14 = scalar_lea.hbm %s2492_s16, 160  ;;  %s1899_s27 = scalar_lea.hbm %s2984_s2, 640 }
  0x65   : > { %p1895_p0 = scmp.ne.s32.totalorder %s2492_s16, %s1894_s14  ;;  %p1900_p10 = scmp.lt.u32.totalorder %s2492_s16, %s2984_s2 }
  0x66   : > { %p1901_p12 = scmp.lt.u32.totalorder %s1899_s27, %s1894_s14  ;;  %p1903_p5 = scmp.lt.u32.totalorder %s1894_s14, %s2492_s16 }
  0x67   : > { %p1897_p6 = pnand %p2949_p2, %p1895_p0 }
  0x68   : > { %p1902_p3 = por %p1901_p12, %p1900_p10 }
  0x69   : > { %p1898_p8 = pneg %p1897_p6 }
  0x6a   : > { %p1904_p9 = por %p1903_p5, %p1902_p3 }
  0x6c   : > { %p1905_p4 = pnand %p1904_p9, %p1898_p8 }
  0x6e   : > { %1908 = shalt.err (!%p1905_p4)
}
  0x6f   : > { %s1909_s11 = scalar_lea.vmem %s2487_s21, 160  ;;  %s2219_s12 = smov [#allocation10]  }
  0x70   : > { %p1910_p0 = scmp.ne.s32.totalorder %s2487_s21, %s1909_s11  ;;  %s1914_s28 = sshll.u32 %s2219_s12, 4  ;;  %s1915_s28 = int_to_ptr.vmem [resolvable:$false] %s1914_s28 }
  0x71   : > { %s1916_s15 = scalar_lea.vmem %s1915_s28, 320  ;;  %p1917_p13 = scmp.lt.s32.totalorder %s2487_s21, %s1915_s28 }
  0x72   : > { %p1912_p6 = pnand %p1910_p0, %p2949_p2  ;;  %p1918_p10 = scmp.lt.s32.totalorder %s1916_s15, %s1909_s11 }
  0x74   : > { %p1913_p11 = pneg %p1912_p6  ;;  %p1919_p12 = por %p1918_p10, %p1917_p13 }
  0x76   : > { %p1920_p3 = pnand %p1919_p12, %p1913_p11 }
  0x78   : > { %1923 = shalt.err (!%p1920_p3)
}
  0x79   : > { %1673 = dma.hbm_to_vmem [thread:$0]  (!%p2469_p7), %s2492_s16, 160, %s2487_s21, %s2496_s25  }
  0x7a   : > { %s1924_s20 = scalar_lea.hbm %s2915_s5, 512 }
  0x7b   : > { %p1925_p4 = scmp.ne.s32.totalorder %s2915_s5, %s1924_s20  ;;  %p1931_p11 = scmp.lt.u32.totalorder %s1924_s20, %s2915_s5 }
  0x7d   : > { %p1927_p13 = pnand %p1925_p4, %p2391_p1 }
  0x7f   : > { %p1928_p9 = pneg %p1927_p13 }
  0x81   : > { %p1933_p8 = pnand %p1931_p11, %p1928_p9 }
  0x83   : > { %1936 = shalt.err (!%p1933_p8)
}
  0x84   : > { %s1937_s12 = scalar_lea.vmem %s277_s24, 512  ;;  %p1945_p10 = scmp.lt.s32.totalorder %s277_s24, %s277_s24 }
  0x85   : > { %p1938_p5 = scmp.ne.s32.totalorder %s277_s24, %s1937_s12  ;;  %p1946_p12 = scmp.lt.s32.totalorder %s1937_s12, %s1937_s12 }
  0x87   : > { %p1940_p0 = pnand %p1938_p5, %p2391_p1  ;;  %p1947_p3 = por %p1946_p12, %p1945_p10 }
  0x89   : > { %p1941_p6 = pneg %p1940_p0 }
  0x8b   : > { %p1948_p2 = pnand %p1947_p3, %p1941_p6 }
  0x8d   : > { %1951 = shalt.err (!%p1948_p2)
}
  0x8e   : > { %p2985_p4 = scmp.ne.s32.totalorder %s2968_s10, 0  ;;  %s2986_s16 = smov 8  }
  0x8f   : > { %s2987_s21 = smov 128   ;;  %s2220_s14 = smov [#allocation16]  }
  0x90   : > { %1663 = dma.hbm_to_vmem [thread:$0]  (!%p2985_p4), %s2915_s5, 512, %s277_s24, [#allocation14], %s2987_s21, %s2987_s21, %s2986_s16  }
  0x91   : > { %s289_s7 = sshll.u32 %s2220_s14, 4  ;;  %s1538_s20 = sshll.u32 %s2204_s22, 2  ;;  %s290_s7 = int_to_ptr.vmem [resolvable:$true] %s289_s7 }
  0x92   : > { %s1539_s27 = sshll.u32 %s2208_s23, 4  ;;  %s1952_s11 = scalar_lea.hbm %s2916_s6, 512 }
  0x93   : > { %p1953_p2 = scmp.ne.s32.totalorder %s2916_s6, %s1952_s11  ;;  %p1959_p11 = scmp.lt.u32.totalorder %s1952_s11, %s2916_s6 }
  0x95   : > { %p1955_p13 = pnand %p1953_p2, %p2391_p1 }
  0x97   : > { %p1956_p9 = pneg %p1955_p13 }
  0x99   : > { %p1961_p8 = pnand %p1959_p11, %p1956_p9 }
  0x9b   : > { %1964 = shalt.err (!%p1961_p8)
}
  0x9c   : > { %s1965_s24 = scalar_lea.vmem %s290_s7, 512  ;;  %p1973_p10 = scmp.lt.s32.totalorder %s290_s7, %s290_s7 }
  0x9d   : > { %p1966_p5 = scmp.ne.s32.totalorder %s290_s7, %s1965_s24  ;;  %p1974_p12 = scmp.lt.s32.totalorder %s1965_s24, %s1965_s24 }
  0x9f   : > { %p1968_p0 = pnand %p1966_p5, %p2391_p1  ;;  %p1975_p3 = por %p1974_p12, %p1973_p10 }
  0xa1   : > { %p1969_p6 = pneg %p1968_p0 }
  0xa3   : > { %p1976_p7 = pnand %p1975_p3, %p1969_p6 }
  0xa5   : > { %1979 = shalt.err (!%p1976_p7)
}
  0xa6   : > { %1666 = dma.hbm_to_vmem [thread:$0]  (!%p2985_p4), %s2916_s6, 512, %s290_s7, [#allocation17], %s2987_s21, %s2987_s21, %s2986_s16  }
  0xa7   : > { %s313_s26 = sadd.s32 %s1539_s27, %s1538_s20  ;;  %s304_s10 = scalar_lea.sflag [#allocation8], %s2462_s8 }
  0xa8   : > { %s1540_s30 = sshll.u32 %s313_s26, 6  ;;  %p2988_p7 = scmp.ne.s32.totalorder %s2982_s0, 0 }
  0xa9   : > { %s2572_s12 = scalar_lea.hbm %s2911_s1, %s1540_s30  ;;  %s1985_s20 = scalar_lea.hbm %s2911_s1, 2048 }
  0xaa   : > { %s1980_s28 = scalar_lea.hbm %s2572_s12, 512  ;;  %p2989_p2 = pneg %p2988_p7 }
  0xab   : > { %p1981_p1 = scmp.ne.s32.totalorder %s2572_s12, %s1980_s28  ;;  %p1986_p4 = scmp.lt.u32.totalorder %s2572_s12, %s2911_s1 }
  0xac   : > { %p1987_p11 = scmp.lt.u32.totalorder %s1985_s20, %s1980_s28  ;;  %p1989_p5 = scmp.lt.u32.totalorder %s1980_s28, %s2572_s12 }
  0xad   : > { %p1983_p13 = pnand %p1981_p1, %p2989_p2 }
  0xae   : > { %p1988_p8 = por %p1987_p11, %p1986_p4 }
  0xaf   : > { %p1984_p9 = pneg %p1983_p13 }
  0xb0   : > { %p1990_p0 = por %p1989_p5, %p1988_p8 }
  0xb2   : > { %p1991_p6 = pnand %p1990_p0, %p1984_p9 }
  0xb4   : > { %1994 = shalt.err (!%p1991_p6)
}
  0xb5   : > { %s1995_s2 = scalar_lea.vmem %s2474_s4, 512  ;;  %p2990_p12 = pmov %p2989_p2 }
  0xb6   : > { %p1996_p10 = scmp.ne.s32.totalorder %s2474_s4, %s1995_s2  ;;  %s2221_s14 = smov [#allocation7]  }
  0xb7   : > { %s2000_s26 = sshll.u32 %s2221_s14, 4  ;;  %s2001_s26 = int_to_ptr.vmem [resolvable:$false] %s2000_s26 }
  0xb8   : > { %p1998_p3 = pnand %p1996_p10, %p2990_p12  ;;  %s2002_s30 = scalar_lea.vmem %s2001_s26, 1024 }
  0xb9   : > { %p2003_p2 = scmp.lt.s32.totalorder %s2474_s4, %s2001_s26  ;;  %p2004_p13 = scmp.lt.s32.totalorder %s2002_s30, %s1995_s2 }
  0xba   : > { %p1999_p1 = pneg %p1998_p3 }
  0xbb   : > { %p2005_p4 = por %p2004_p13, %p2003_p2 }
  0xbd   : > { %p2006_p11 = pnand %p2005_p4, %p1999_p1 }
  0xbf   : > { %2009 = shalt.err (!%p2006_p11)
}
  0xc0   : > { %s2222_s9 = smov 512   ;;  %s2223_s11 = smov 256  }
  0xc1   : > { %s2224_s28 = smov 16   ;;  %s349_s15 = sand.u32 1, %s2180_s17  }
  0xc2   : > { %1670 = dma.hbm_to_vmem [thread:$0]  (!%p2988_p7), %s2572_s12, 512, %s2474_s4, %s304_s10, %s2222_s9, %s2223_s11, %s2224_s28  }
  0xc3   : > { %s1584_s7 = sshll.u32 %s2208_s23, 9  ;;  %s1542_s20 = sshll.u32 %s349_s15, 5 }
  0xc4   : > { %s2605_s2 = scalar_lea.hbm %s2913_s3, %s1584_s7  ;;  %s351_s14 = scalar_lea.vmem [#allocation12], %s1542_s20 }
  0xc5   : > { %s358_s26 = sshll.u32 %s351_s14, 4  ;;  %s2010_s30 = scalar_lea.hbm %s2605_s2, 512  ;;  %s2607_s26 = int_to_ptr.vmem [resolvable:$true] %s358_s26 }
  0xc6   : > { %p2011_p9 = scmp.ne.s32.totalorder %s2605_s2, %s2010_s30  ;;  %p2991_p8 = scmp.ne.s32.totalorder %s2983_s19, 0 }
  0xc7   : > { %s2015_s0 = scalar_lea.hbm %s2913_s3, 1024  ;;  %p2016_p6 = scmp.lt.u32.totalorder %s2605_s2, %s2913_s3 }
  0xc8   : > { %p2012_p7 = pneg %p2991_p8  ;;  %p2017_p10 = scmp.lt.u32.totalorder %s2015_s0, %s2010_s30 }
  0xc9   : > { %p2019_p3 = scmp.lt.u32.totalorder %s2010_s30, %s2605_s2 }
  0xca   : > { %p2013_p5 = pnand %p2012_p7, %p2011_p9  ;;  %p2018_p12 = por %p2017_p10, %p2016_p6 }
  0xcc   : > { %p2014_p0 = pneg %p2013_p5  ;;  %p2020_p1 = por %p2019_p3, %p2018_p12 }
  0xce   : > { %p2021_p2 = pnand %p2020_p1, %p2014_p0 }
  0xd0   : > { %2024 = shalt.err (!%p2021_p2)
}
  0xd1   : > { %s2025_s9 = scalar_lea.vmem %s2607_s26, 512  ;;  %s2225_s11 = smov [#allocation12]  }
  0xd2   : > { %p2026_p13 = scmp.ne.s32.totalorder %s2607_s26, %s2025_s9  ;;  %s2030_s28 = sshll.u32 %s2225_s11, 4  ;;  %s2031_s28 = int_to_ptr.vmem [resolvable:$false] %s2030_s28 }
  0xd3   : > { %s2032_s15 = scalar_lea.vmem %s2031_s28, 1024  ;;  %p2033_p9 = scmp.lt.s32.totalorder %s2607_s26, %s2031_s28 }
  0xd4   : > { %p2028_p4 = pnand %p2026_p13, %p2012_p7  ;;  %p2034_p5 = scmp.lt.s32.totalorder %s2032_s15, %s2025_s9 }
  0xd6   : > { %p2029_p11 = pneg %p2028_p4  ;;  %p2035_p6 = por %p2034_p5, %p2033_p9 }
  0xd8   : > { %p2036_p10 = pnand %p2035_p6, %p2029_p11 }
  0xda   : > { %2039 = shalt.err (!%p2036_p10)
}
  0xdb   : > { %1676 = dma.hbm_to_vmem [thread:$0]  (!%p2991_p8), %s2605_s2, 512, %s2607_s26, %s2496_s25, %s2987_s21, %s2987_s21, %s2986_s16  }
  0xdc   : > { %p2992_p7 = scmp.ne.s32.totalorder %s2967_s29, 0 }
  0xdd   : > { %s372_s7 = sand.u32 (!%p2992_p7), 1, %s2188_s18   ;;  %p2993_p0 = scmp.ne.s32.totalorder (!%p2992_p7), %s2975_s13, 0 }
  0xde   : > { %370 = sbr.rel (%p2992_p7) target bundleno = 1322 (0x52a), region = 44  ;;  %s1546_s20 = sshll.u32 (!%p2992_p7), %s372_s7, 5 }
  0xdf   : > { %s373_s27 = scalar_lea.sflag (!%p2992_p7), [#allocation8], %s372_s7  ;;  %s2641_s24 = scalar_lea.vmem (!%p2992_p7), [#allocation7], %s1546_s20 }
  0xe5   : > { %2143 = dma.done.wait (%p2993_p0), %s373_s27, 512  }
  0xe6   : > { %2145 = vsyncadd (%p2993_p0), %s373_s27, 4294966784  ;;  %s2994_s19 = sld [smem:[#allocation35_spill]]  ;;  %s1634_s30 = smul.u32 10, %s372_s7 }
  0xe8   : > { %s2648_s16 = scalar_lea.vmem [#allocation10], %s1634_s30 }
  0xec   : > { %s381_s14 = sand.u32 1, %s2994_s19  }
  0xed   : > { %s382_s25 = scalar_lea.sflag [#allocation11], %s381_s14 }
  0xee   : > { %2147 = dma.done.wait (%p2993_p0), %s382_s25, 160  }
  0xef   : > { %2149 = vsyncadd (%p2993_p0), %s382_s25, 4294967136  ;;  %s2995_s29 = sld [smem:[#allocation30_spill]]  ;;  %s2996_s21 = sld [smem:[#allocation36_spill]] }
  0xf5   : > { %s2655_s2 = sand.u32 1, %s2995_s29   ;;  %p2997_p8 = scmp.ne.s32.totalorder %s2996_s21, 0 }
  0xf6   : > { %s1547_s26 = sshll.u32 %s2655_s2, 5 }
  0xf7   : > { %s2658_s4 = scalar_lea.vmem [#allocation12], %s1547_s26 }
  0xf8   : > { %2151 = dma.done.wait (%p2997_p8), %s382_s25, 512  }
  0xf9   : > { %2153 = vsyncadd (%p2997_p8), %s382_s25, 4294966784  ;;  %p2998_p12 = scmp.eq.s32.totalorder %s2994_s19, 0 }
  0xfb   : > { %2155 = dma.done.wait (%p2998_p12), [#allocation14], 1024   ;;  %p2999_p3 = pmov %p2998_p12 }
  0xfd   : > { %2157 = vsyncadd (%p2999_p3), [#allocation14], 4294966272  ;;  %p3000_p1 = pmov %p2999_p3 }
  0xff   : > { %2159 = dma.done.wait (%p3000_p1), [#allocation17], 512   ;;  %p3001_p2 = pmov %p3000_p1 }
 0x100   : > { %s1551_s13 = sshll.u32 %s2655_s2, 4  ;;  %s1552_s8 = sshll.u32 %s2655_s2, 3 }
 0x101   : > { %2161 = vsyncadd (%p3001_p2), [#allocation17], 4294966784  ;;  %s2674_s0 = scalar_lea.vmem [#allocation18], %s1551_s13  ;;  %s2676_s12 = scalar_lea.vmem [#allocation19], %s1552_s8 }
 0x102   : > { %s3002_s10 = sld [smem:[#allocation32_spill]] }
 0x108   : > { %p1553_p13 = scmp.ne.s32.totalorder %s3002_s10, 0 }
 0x109   : > { %vm457_vm0 = vcmask (!%p1553_p13), 0   ;;  %vm460_vm1 = vcmask (!%p1553_p13), 7168   ;;  %v2226_v0 = vmov (!%p1553_p13), -1e+30   ;;  %v2227_v1 = vmov (!%p1553_p13), 0.0  }
 0x10a   : > { %456 = sbr.rel (%p1553_p13) target bundleno = 273 (0x111), region = 72  ;;  %458 = vst.msk [vmem:[#allocation2] sm:$0x1] (!%p1553_p13), %vm457_vm0, %v2226_v0  ;;  %459 = vst.msk [vmem:[#allocation3] sm:$0x1] (!%p1553_p13), %vm457_vm0, %v2227_v1 }
 0x10b   : > { %461 = vst.msk [vmem:[#allocation4] sm:$0xff] (!%p1553_p13), %vm460_vm1, %v2227_v1  ;;  %462 = vst.msk [vmem:[#allocation4 + $0x8] sm:$0xff] (!%p1553_p13), %vm460_vm1, %v2227_v1 }
 0x111 PF: > { %v671_v2 = vld [vmem:[%s2648_s16 + $0x8] sm:$0x3]  ;;  %v677_v3 = vlaneseq  ;;  %v2228_v4 = vmov 1983009808   ;;  %v2681_v6 = vld [vmem:[%s2641_s24] sm:$0xff]  ;;  %v2693_v10 = vld [vmem:[%s2641_s24 + $0x18] sm:$0xff] }
 0x112   : > { %v675_v5 = vunpack.c.l.s4 %v2228_v4  ;;  %v2684_v7 = vld [vmem:[%s2641_s24 + $0x10] sm:$0xff]  ;;  %v2687_v8 = vld [vmem:[%s2641_s24 + $0x8] sm:$0xff]  ;;  %v704_v12 = vcombine.low %v671_v2, %v671_v2  ;;  %v2229_v20 = vmov 0.0   ;;  %vm479_vm2 = vcmask 130048   ;;  %s2230_s9 = smov 127   ;;  %v476_v26 = vld [vmem:[#allocation13 + $0x8] sm:$0xff] }
 0x113   : > { %v2690_v9 = vshrl.u32 %v677_v3, 7  ;;  %v1627_v13 = vcombine.high %v2681_v6, %v2684_v7  ;;  %v1628_v14 = vcombine.low %v2681_v6, %v2684_v7  ;;  %v670_v15 = vld [vmem:[%s2648_s16] sm:$0xff]  ;;  %v1629_v16 = vcombine.high %v2687_v8, %v2693_v10  ;;  %556 = vmatprep.mubr.f32.mxu0 %v2229_v20  ;;  %v475_v23 = vld [vmem:[#allocation13] sm:$0xff]  ;;  %645 = vmatprep.mubr.f32.mxu1 %v2229_v20  ;;  %s2231_s11 = smov 126   ;;  %s3003_s28 = sld [smem:[#allocation33_spill]] }
 0x114   : > { %v676_v11 = vunpack.c.0.s8 %v675_v5  ;;  %v1630_v17 = vcombine.low %v2687_v8, %v2693_v10  ;;  %v695_v19 = vcombine.low %v670_v15, %v670_v15  ;;  %v673_v25 = vcombine.high %v670_v15, %v670_v15  ;;  %v477_v30 = vld [vmem:[#allocation13 + $0x10] sm:$0xff]  ;;  %v478_v33 = vld [vmem:[#allocation13 + $0x18] sm:$0xff]  ;;  %v978_v36 = vld [vmem:[%s2658_s4] sm:$0xff]  ;;  %s3004_s15 = sld [smem:[#allocation32_spill]] }
 0x115   : > { %1588 = vmatprep.subr.bf16.mxu0 %v1627_v13  ;;  %1592 = vmatprep.subr.bf16.mxu1 %v1629_v16  ;;  %v979_v37 = vld [vmem:[%s2658_s4 + $0x8] sm:$0xff]  ;;  %v2232_v38 = vmov 0   ;;  %v980_v39 = vld [vmem:[%s2658_s4 + $0x10] sm:$0xff]  ;;  %v981_v40 = vld [vmem:[%s2658_s4 + $0x18] sm:$0xff]  ;;  %vm729_vm3 = vcmask 1039360   ;;  %vm760_vm4 = vcmask 1041408  }
 0x116   : > { %v679_v18 = vsub.s32 %v676_v11, %v2690_v9  ;;  %1590 = vmatpush1.bf16.msra.mxu0 %v1628_v14  ;;  %1594 = vmatpush1.bf16.msra.mxu1 %v1630_v17  ;;  %v1050_v41 = vld [vmem:[#allocation16] sm:$0xff]  ;;  %v1051_v42 = vld [vmem:[#allocation16 + $0x8] sm:$0xff]  ;;  %v1052_v43 = vld [vmem:[#allocation16 + $0x10] sm:$0xff]  ;;  %vm751_vm5 = vcmask 1031168   ;;  %vm765_vm6 = vcmask 1043456   ;;  %vm787_vm7 = vcmask 1045504  }
 0x117   : > { %1800 = vset.pattern.permute.xlu0 %v2232_v38  ;;  %1801 = vset.pattern.permute.xlu1 %v2232_v38  ;;  %v1053_v44 = vld [vmem:[#allocation16 + $0x18] sm:$0xff]  ;;  %vm774_vm8 = vcmask 48128   ;;  %v770_v5 = vld [vmem:[#allocation15] sm:$0xff]  ;;  %v772_v16 = vld [vmem:[#allocation15 + $0x10] sm:$0xff]  ;;  %vm1256_vm13 = vcmp.lt.s32.totalorder %v677_v3, 512  ;;  %vm1186_vm14 = vcmask 0  }
 0x118   : > { %v711_v21 = vrot.slane %v704_v12, %v679_v18  ;;  %v2706_v22 = vrot.slane %v670_v15, %v679_v18  ;;  %v702_v24 = vrot.slane %v695_v19, %v679_v18  ;;  %v2717_v29 = vrot.slane %v673_v25, %v679_v18  ;;  %v771_v15 = vld [vmem:[#allocation15 + $0x8] sm:$0xff]  ;;  %v773_v17 = vld [vmem:[#allocation15 + $0x18] sm:$0xff] }
 0x119   : > { %1554 = vmatmul.mubr.msk.f32.vlgmr.msra.gmra.mrb[0].mxu0 %vm479_vm2, %v475_v23  ;;  %1558 = vmatmul.mubr.msk.f32.vlgmr.msra.gmra.mrb[0].mxu1 %vm479_vm2, %v475_v23  ;;  %v718_v32 = vrot.slane %v671_v2, %v679_v18  ;;  %s1137_s7 = sld [smem:[#allocation6 + %s3003_s28]]  ;;  %vm1218_vm15 = vcmask 7168  }
 0x11a   : > { %727 = vrot.lane.b32.xlu1 %v711_v21, %s2230_s9  ;;  %723 = vrot.lane.b32.xlu0 %v2706_v22, %s2230_s9  ;;  %v703_v27 = vcombine.high %v702_v24, %v702_v24  ;;  %v688_v28 = vcombine.high %v2706_v22, %v2706_v22  ;;  %v739_v31 = vcombine.low %v2717_v29, %v2717_v29  ;;  %s1574_s20 = sshll.u32 %s3004_s15, 9  ;;  %p1575_p4 = scmp.ne.s32.totalorder %s3004_s15, 1 }
 0x11b   : > { %562 = vmatprep.mubr.f32.mxu0 %v2229_v20  ;;  %651 = vmatprep.mubr.f32.mxu1 %v2229_v20  ;;  %v738_v34 = vcombine.low %v2706_v22, %v2706_v22  ;;  %v740_v35 = vcombine.low %v718_v32, %v718_v32  ;;  %v689_v55 = vcombine.high %v2717_v29, %v2717_v29  ;;  %s1251_s27 = sshra.s32 %s1574_s20, 7 }
 0x11c   : > { %s1253_s24 = scalar_lea.vmem %s2676_s12, %s1251_s27 [#allocation19] }
 0x11d   : > { %1555 = vmatmul.mubr.msk.f32.gmra.mrb[2].mxu0 %vm479_vm2, %v476_v26  ;;  %1559 = vmatmul.mubr.msk.f32.gmra.mrb[2].mxu1 %vm479_vm2, %v476_v26 }
 0x11e   : > { %743 = vrot.lane.b32.xlu1 %v2706_v22, %s2231_s11  ;;  %719 = vrot.lane.b32.xlu0 %v702_v24, %s2230_s9 }
 0x11f   : > { %568 = vmatprep.mubr.f32.mxu0 %v2229_v20  ;;  %657 = vmatprep.mubr.f32.mxu1 %v2229_v20 }
 0x121   : > { %1556 = vmatmul.mubr.msk.f32.gmra.mrb[4].mxu0 %vm479_vm2, %v477_v30  ;;  %1560 = vmatmul.mubr.msk.f32.gmra.mrb[4].mxu1 %vm479_vm2, %v477_v30 }
 0x122   : > { %721 = vrot.lane.b32.xlu0 %v703_v27, %s2230_s9  ;;  %725 = vrot.lane.b32.xlu1 %v688_v28, %s2230_s9 }
 0x123   : > { %574 = vmatprep.mubr.f32.mxu0 %v2229_v20  ;;  %663 = vmatprep.mubr.f32.mxu1 %v2229_v20 }
 0x125   : > { %1557 = vmatmul.mubr.msk.f32.gmra.mrb[6].mxu0 %vm479_vm2, %v478_v33  ;;  %1561 = vmatmul.mubr.msk.f32.gmra.mrb[6].mxu1 %vm479_vm2, %v478_v33 }
 0x126   : > { %747 = vrot.lane.b32.xlu1 %v2717_v29, %s2231_s11  ;;  %745 = vrot.lane.b32.xlu0 %v739_v31, %s2231_s11 }
 0x127   : > { %864 = vmatprep.mubr.f32.mxu0 %v2229_v20  ;;  %953 = vmatprep.mubr.f32.mxu1 %v2229_v20 }
 0x12a   : > { %741 = vrot.lane.b32.xlu1 %v738_v34, %s2231_s11  ;;  %749 = vrot.lane.b32.xlu0 %v740_v35, %s2231_s11 }
 0x12e   : > { %984 = vperm.xlu0 %1800, %v978_v36   ;;  %989 = vperm.xlu1 %1801, %v979_v37  }
 0x132   : > { %994 = vperm.xlu1 %1801, %v980_v39   ;;  %999 = vperm.xlu0 %1800, %v981_v40  }
 0x136   : > { %1056 = vperm.xlu1 %1801, %v1050_v41   ;;  %1061 = vperm.xlu0 %1800, %v1051_v42  }
 0x13a   : > { %1066 = vperm.xlu1 %1801, %v1052_v43   ;;  %1071 = vperm.xlu0 %1800, %v1053_v44  }
 0x18c   : > { %v728_v45 = vpop.permute.xlu1 %727  ;;  %v724_v46 = vpop.permute.xlu0 %723 }
 0x190   : > { %v744_v47 = vpop.permute.xlu1 %743  ;;  %v720_v48 = vpop.permute.xlu0 %719 }
 0x194   : > { %v722_v49 = vpop.permute.xlu0 %721  ;;  %v726_v50 = vpop.permute.xlu1 %725 }
 0x195   : > { %v731_v51 = vsel %vm729_vm3, %v722_v49, %v724_v46  ;;  %v730_v57 = vsel %vm729_vm3, %v720_v48, %v722_v49  ;;  %v733_v58 = vsel %vm729_vm3, %v726_v50, %v728_v45  ;;  %v732_v60 = vsel %vm729_vm3, %v724_v46, %v726_v50 }
 0x196   : > { %v762_v54 = vsel %vm760_vm4, %v688_v28, %v731_v51  ;;  %v761_v0 = vsel %vm760_vm4, %v2706_v22, %v730_v57  ;;  %v764_v1 = vsel %vm760_vm4, %v689_v55, %v733_v58  ;;  %v763_v11 = vsel %vm760_vm4, %v2717_v29, %v732_v60 }
 0x198   : > { %v748_v52 = vpop.permute.xlu1 %747  ;;  %v746_v53 = vpop.permute.xlu0 %745 }
 0x199   : > { %v753_v56 = vsel %vm751_vm5, %v744_v47, %v746_v53  ;;  %v754_v61 = vsel %vm751_vm5, %v746_v53, %v748_v52 }
 0x19a   : > { %v767_v59 = vsel %vm765_vm6, %v762_v54, %v753_v56  ;;  %v768_v14 = vsel %vm765_vm6, %v763_v11, %v754_v61 }
 0x19b   : > { %1562 = vmatprep.subr.msk.mxu0 %vm787_vm7, %v767_v59 }
 0x19c   : > { %v742_v62 = vpop.permute.xlu1 %741  ;;  %v750_v63 = vpop.permute.xlu0 %749 }
 0x19d   : > { %v752_v2 = vsel %vm751_vm5, %v742_v62, %v744_v47  ;;  %v755_v4 = vsel %vm751_vm5, %v748_v52, %v750_v63 }
 0x19e   : > { %v766_v12 = vsel %vm765_vm6, %v761_v0, %v752_v2  ;;  %v769_v13 = vsel %vm765_vm6, %v764_v1, %v755_v4 }
 0x19f   : > { %1563 = vmatpush1.msk.msra.mxu0 %vm787_vm7, %v766_v12  ;;  %1568 = vmatprep.subr.msk.mxu1 %vm787_vm7, %v769_v13 }
 0x1a0   : > { %1564 = vmatmul.mubr.msk.f32.vlgmr.msra.gmra.mrb[0].mxu0 %vm774_vm8, %v770_v5  ;;  %1569 = vmatpush1.msk.msra.mxu1 %vm787_vm7, %v768_v14 }
 0x1a1   : > { %1570 = vmatmul.mubr.msk.f32.vlgmr.msra.gmra.mrb[0].mxu1 %vm774_vm8, %v770_v5  ;;  %870 = vmatprep.mubr.f32.mxu0 %v2229_v20 }
 0x1a2   : > { %959 = vmatprep.mubr.f32.mxu1 %v2229_v20 }
 0x1a4   : > { %1565 = vmatmul.mubr.msk.f32.gmra.mrb[2].mxu0 %vm774_vm8, %v771_v15 }
 0x1a5   : > { %1571 = vmatmul.mubr.msk.f32.gmra.mrb[2].mxu1 %vm774_vm8, %v771_v15  ;;  %876 = vmatprep.mubr.f32.mxu0 %v2229_v20 }
 0x1a6   : > { %965 = vmatprep.mubr.f32.mxu1 %v2229_v20 }
 0x1a8   : > { %1566 = vmatmul.mubr.msk.f32.gmra.mrb[4].mxu0 %vm774_vm8, %v772_v16 }
 0x1a9   : > { %1572 = vmatmul.mubr.msk.f32.gmra.mrb[4].mxu1 %vm774_vm8, %v772_v16  ;;  %882 = vmatprep.mubr.f32.mxu0 %v2229_v20 }
 0x1aa   : > { %971 = vmatprep.mubr.f32.mxu1 %v2229_v20 }
 0x1ac   : > { %1567 = vmatmul.mubr.msk.f32.gmra.mrb[6].mxu0 %vm774_vm8, %v773_v17 }
 0x1ad   : > { %1573 = vmatmul.mubr.msk.f32.gmra.mrb[6].mxu1 %vm774_vm8, %v773_v17  ;;  %v985_v18 = vpop.permute.xlu0 %984  ;;  %v990_v27 = vpop.permute.xlu1 %989 }
 0x1b1   : > { %v995_v36 = vpop.permute.xlu1 %994  ;;  %v1000_v45 = vpop.permute.xlu0 %999 }
 0x1b5   : > { %v1057_v56 = vpop.permute.xlu1 %1056  ;;  %v1062_v60 = vpop.permute.xlu0 %1061 }
 0x1b9   : > { %v1067_v17 = vpop.permute.xlu1 %1066 }
 0x273   : > { %v866_v19 = vpop.f32.mrb[0].mxu0 }
 0x274   : > { %v1595_v21 = vadd.f32 %v985_v18, %v866_v19  ;;  %v868_v22 = vpop.f32.mrb[1].mxu0  ;;  %v955_v23 = vpop.f32.mrb[0].mxu1 }
 0x275   : > { %v1596_v24 = vadd.f32 %v985_v18, %v868_v22  ;;  %v1603_v25 = vadd.f32 %v985_v18, %v955_v23  ;;  %v957_v26 = vpop.f32.mrb[1].mxu1 }
 0x276   : > { %1809 = vtanh.f32 %v1595_v21  ;;  %v1604_v28 = vadd.f32 %v985_v18, %v957_v26 }
 0x277   : > { %1811 = vtanh.f32 %v1596_v24  ;;  %v872_v29 = vpop.f32.mrb[2].mxu0 }
 0x278   : > { %1813 = vtanh.f32 %v1603_v25  ;;  %v1597_v30 = vadd.f32 %v990_v27, %v872_v29  ;;  %v874_v20 = vpop.f32.mrb[3].mxu0  ;;  %v961_v31 = vpop.f32.mrb[2].mxu1 }
 0x279   : > { %1815 = vtanh.f32 %v1604_v28  ;;  %v1598_v32 = vadd.f32 %v990_v27, %v874_v20  ;;  %v1605_v33 = vadd.f32 %v990_v27, %v961_v31  ;;  %v963_v34 = vpop.f32.mrb[3].mxu1  ;;  %v1072_v20 = vpop.permute.xlu0 %1071 }
 0x27a   : > { %1817 = vtanh.f32 %v1597_v30  ;;  %v1606_v35 = vadd.f32 %v990_v27, %v963_v34 }
 0x27b   : > { %1819 = vtanh.f32 %v1598_v32  ;;  %v878_v37 = vpop.f32.mrb[4].mxu0 }
 0x27c   : > { %1821 = vtanh.f32 %v1605_v33  ;;  %v1599_v38 = vadd.f32 %v995_v36, %v878_v37  ;;  %v880_v39 = vpop.f32.mrb[5].mxu0  ;;  %v967_v40 = vpop.f32.mrb[4].mxu1 }
 0x27d   : > { %1823 = vtanh.f32 %v1606_v35  ;;  %v1600_v41 = vadd.f32 %v995_v36, %v880_v39  ;;  %v1607_v42 = vadd.f32 %v995_v36, %v967_v40  ;;  %v969_v43 = vpop.f32.mrb[5].mxu1  ;;  %v1128_v40 = vand.u32 127, %v677_v3 }
 0x27e   : > { %1825 = vtanh.f32 %v1599_v38  ;;  %v1608_v44 = vadd.f32 %v995_v36, %v969_v43 }
 0x27f   : > { %1827 = vtanh.f32 %v1600_v41  ;;  %v884_v46 = vpop.f32.mrb[6].mxu0 }
 0x280   : > { %v1810_v47 = vpop.eup %1809  ;;  %1829 = vtanh.f32 %v1607_v42  ;;  %v1601_v48 = vadd.f32 %v1000_v45, %v884_v46  ;;  %v886_v49 = vpop.f32.mrb[7].mxu0 }
 0x281   : > { %v973_v50 = vpop.f32.mrb[6].mxu1  ;;  %v1812_v51 = vpop.eup %1811  ;;  %1831 = vtanh.f32 %v1608_v44  ;;  %v1602_v52 = vadd.f32 %v1000_v45, %v886_v49  ;;  %v1074_v62 = vmul.f32 %v1810_v47, %v1057_v56  ;;  %v1129_v49 = vadd.s32 128, %v1128_v40 }
 0x282   : > { %v1609_v53 = vadd.f32 %v1000_v45, %v973_v50  ;;  %v975_v54 = vpop.f32.mrb[7].mxu1  ;;  %v1814_v55 = vpop.eup %1813  ;;  %1833 = vtanh.f32 %v1601_v48  ;;  %v1075_v1 = vmul.f32 %v1812_v51, %v1057_v56  ;;  %v1132_v50 = vstv %s1574_s20 }
 0x283   : > { %v1610_v57 = vadd.f32 %v1000_v45, %v975_v54  ;;  %v1816_v58 = vpop.eup %1815  ;;  %1835 = vtanh.f32 %v1602_v52  ;;  %v1076_v5 = vmul.f32 %v1814_v55, %v1057_v56 }
 0x284   : > { %v1818_v59 = vpop.eup %1817  ;;  %1837 = vtanh.f32 %v1609_v53  ;;  %v1077_v14 = vmul.f32 %v1816_v58, %v1057_v56  ;;  %v1130_v53 = vadd.s32 256, %v1128_v40  ;;  %v1131_v56 = vadd.s32 384, %v1128_v40 }
 0x285   : > { %v1820_v61 = vpop.eup %1819  ;;  %1839 = vtanh.f32 %v1610_v57  ;;  %v1078_v63 = vmul.f32 %v1818_v59, %v1062_v60  ;;  %v2233_v57 = vmov 1966171168  }
 0x286   : > { %v1822_v0 = vpop.eup %1821  ;;  %v1079_v2 = vmul.f32 %v1820_v61, %v1062_v60  ;;  %v1229_v58 = vunpack.c.l.s4 %v2233_v57  ;;  %v1133_v61 = vadd.s32 %v1132_v50, %v1128_v40 }
 0x287   : > { %v1824_v4 = vpop.eup %1823  ;;  %v1080_v11 = vmul.f32 %v1822_v0, %v1062_v60  ;;  %v1090_v12 = vadd.f32 %v1078_v63, %v1074_v62  ;;  %v1134_v0 = vadd.s32 %v1132_v50, %v1129_v49 }
 0x288   : > { %v1826_v13 = vpop.eup %1825  ;;  %v1081_v15 = vmul.f32 %v1824_v4, %v1062_v60  ;;  %v1099_v16 = vadd.f32 %v1079_v2, %v1075_v1  ;;  %v1138_v1 = vstv %s1137_s7 }
 0x289   : > { %v1828_v18 = vpop.eup %1827  ;;  %v1108_v19 = vadd.f32 %v1080_v11, %v1076_v5  ;;  %v1082_v21 = vmul.f32 %v1826_v13, %v1067_v17  ;;  %v1135_v5 = vadd.s32 %v1132_v50, %v1130_v53  ;;  %v1136_v13 = vadd.s32 %v1132_v50, %v1131_v56 }
 0x28a   : > { %v1830_v22 = vpop.eup %1829  ;;  %v1117_v23 = vadd.f32 %v1081_v15, %v1077_v14  ;;  %v1083_v24 = vmul.f32 %v1828_v18, %v1067_v17  ;;  %v1230_v14 = vunpack.c.0.s8 %v1229_v58  ;;  %vm1139_vm9 = vcmp.ge.s32.totalorder %v1133_v61, %v1138_v1 }
 0x28b   : > { %v1832_v25 = vpop.eup %1831  ;;  %v1084_v26 = vmul.f32 %v1830_v22, %v1067_v17  ;;  %v1091_v27 = vadd.f32 %v1090_v12, %v1082_v21  ;;  %vm1140_vm10 = vcmp.ge.s32.totalorder %v1134_v0, %v1138_v1  ;;  %vm1141_vm11 = vcmp.ge.s32.totalorder %v1135_v5, %v1138_v1 }
 0x28c   : > { %v1834_v28 = vpop.eup %1833  ;;  %v1085_v29 = vmul.f32 %v1832_v25, %v1067_v17  ;;  %v1100_v30 = vadd.f32 %v1099_v16, %v1083_v24  ;;  %vm1142_vm12 = vcmp.ge.s32.totalorder %v1136_v13, %v1138_v1  ;;  %v1233_v24 = vsub.s32 %v1230_v14, %v2690_v9 }
 0x28d   : > { %v1836_v31 = vpop.eup %1835  ;;  %v1109_v32 = vadd.f32 %v1108_v19, %v1084_v26  ;;  %v1086_v33 = vmul.f32 %v1834_v28, %v1072_v20  ;;  %v472_v53 = vunpack.c.h.bf16 %v2684_v7  ;;  %v473_v58 = vunpack.c.l.bf16 %v2693_v10 }
 0x28e   : > { %v1838_v34 = vpop.eup %1837  ;;  %v1118_v35 = vadd.f32 %v1117_v23, %v1085_v29  ;;  %v1087_v36 = vmul.f32 %v1836_v31, %v1072_v20 }
 0x28f   : > { %v1840_v37 = vpop.eup %1839  ;;  %v1088_v38 = vmul.f32 %v1838_v34, %v1072_v20  ;;  %v1092_v39 = vadd.f32 %v1091_v27, %v1086_v33 }
 0x290   : > { %v1089_v41 = vmul.f32 %v1840_v37, %v1072_v20  ;;  %v1101_v42 = vadd.f32 %v1100_v30, %v1087_v36  ;;  %v1147_v37 = vld [vmem:[#allocation2] sm:$0x1] }
 0x291   : > { %v1093_v43 = vrot.slane %v1092_v39, 4  ;;  %v1110_v44 = vadd.f32 %v1109_v32, %v1088_v38 }
 0x292   : > { %v1102_v45 = vrot.slane %v1101_v42, 4  ;;  %v1119_v46 = vadd.f32 %v1118_v35, %v1089_v41  ;;  %v2790_v41 = vsub.s32 0, %v2690_v9  ;;  %v471_v9 = vunpack.c.l.bf16 %v2684_v7 }
 0x293   : > { %v1094_v47 = vadd.f32 %v1093_v43, %v1092_v39  ;;  %v1111_v48 = vrot.slane %v1110_v44, 4  ;;  %v474_v7 = vunpack.c.h.bf16 %v2693_v10 }
 0x294   : > { %v1103_v51 = vadd.f32 %v1102_v45, %v1101_v42  ;;  %v1120_v52 = vrot.slane %v1119_v46, 4 }
 0x295   : > { %v1112_v54 = vadd.f32 %v1111_v48, %v1110_v44  ;;  %v1095_v55 = vrot.slane %v1094_v47, 2 }
 0x296   : > { %v1121_v59 = vadd.f32 %v1120_v52, %v1119_v46  ;;  %v1104_v60 = vrot.slane %v1103_v51, 2  ;;  %v468_v52 = vunpack.c.h.bf16 %v2681_v6 }
 0x297   : > { %v1096_v62 = vadd.f32 %v1095_v55, %v1094_v47  ;;  %v1113_v63 = vrot.slane %v1112_v54, 2  ;;  %v469_v55 = vunpack.c.l.bf16 %v2687_v8 }
 0x298   : > { %v1105_v2 = vadd.f32 %v1104_v60, %v1103_v51  ;;  %v1122_v4 = vrot.slane %v1121_v59, 2  ;;  %v467_v51 = vunpack.c.l.bf16 %v2681_v6 }
 0x299   : > { %v1097_v11 = vrot.slane %v1096_v62, 1  ;;  %v1114_v12 = vadd.f32 %v1113_v63, %v1112_v54 }
 0x29a   : > { %v1106_v15 = vrot.slane %v1105_v2, 1  ;;  %v1123_v16 = vadd.f32 %v1122_v4, %v1121_v59 }
 0x29b   : > { %v1098_v17 = vadd.f32 %v1097_v11, %v1096_v62  ;;  %v1115_v18 = vrot.slane %v1114_v12, 1  ;;  %v470_v62 = vunpack.c.h.bf16 %v2687_v8 }
 0x29c   : > { %v1107_v19 = vadd.f32 %v1106_v15, %v1105_v2  ;;  %v1124_v21 = vrot.slane %v1123_v16, 1 }
 0x29d   : > { %v1116_v22 = vadd.f32 %v1115_v18, %v1114_v12  ;;  %v1143_v23 = vsel %vm1139_vm9, -inf, %v1098_v17 }
 0x29e   : > { %v1125_v25 = vadd.f32 %v1124_v21, %v1123_v16  ;;  %v1144_v26 = vsel %vm1140_vm10, -inf, %v1107_v19  ;;  %v1178_v21 = vld [vmem:[#allocation3] sm:$0x1] }
 0x29f   : > { %v1145_v27 = vsel %vm1141_vm11, -inf, %v1116_v22  ;;  %v1148_v28 = vmax.f32 %v1143_v23, %v1144_v26  ;;  %v1226_v29 = vcombine.low %v1143_v23, %v1144_v26 }
 0x2a0   : > { %v1146_v30 = vsel %vm1142_vm12, -inf, %v1125_v25  ;;  %v1189_v25 = vld [vmem:[#allocation4 + $0x8] sm:$0xff] }
 0x2a1   : > { %v1149_v20 = vmax.f32 %v1145_v27, %v1146_v30  ;;  %v1227_v31 = vcombine.low %v1145_v27, %v1146_v30  ;;  %v1234_v32 = vrot.slane %v1226_v29, %v1233_v24 }
 0x2a3   : > { %v1150_v33 = vmax.f32 %v1148_v28, %v1149_v20  ;;  %v1241_v34 = vrot.slane %v1227_v31, %v1233_v24 }
 0x2a5   : > { %v1242_v35 = vcombine.low %v1234_v32, %v1241_v34  ;;  %1151 = vmax.xlane.f32.xlu1 %v1150_v33  ;;  %v2234_v34 = vmov (!%p1575_p4), 0  }
 0x2a7   : > { %v1249_v36 = vrot.slane %v1242_v35, %v1233_v24 }
 0x2a9   : > { %1258 = vst.msk [vmem:[%s1253_s24] sm:$0xf] %vm1256_vm13, %v1249_v36 }
 0x332   : > { %v1152_v38 = vpop.xlane.xlu1 %1151 }
 0x333   : > { %v1153_v39 = vmax.f32 %v1147_v37, %v1152_v38 }
 0x335   : > { %v1154_v40 = vsub.f32 %v1147_v37, %v1153_v39  ;;  %1221 = vst.msk [vmem:[#allocation2] sm:$0x1] %vm1186_vm14, %v1153_v39  ;;  %1159 = vperm.xlu0 %1800, %v1153_v39  }
 0x337   : > { %v1155_v8 = vmul.f32 1.442695, %v1154_v40 }
 0x339   : > { %1851 = vset.pattern.permute.xlu0 (!%p1575_p4), %v2234_v34 }
 0x33c   : > { %v1279_v32 = vld [vmem:[#allocation2] sm:$0x1] (!%p1575_p4) }
 0x3b4   : > { %v1160_v42 = vpop.permute.xlu0 %1159 }
 0x3b5   : > { %v1165_v43 = vrot.slane %v1160_v42, %v2790_v41 }
 0x3b7   : > { %v1166_v44 = vsub.f32 %v1143_v23, %v1165_v43  ;;  %v1167_v45 = vsub.f32 %v1144_v26, %v1165_v43  ;;  %v1168_v46 = vsub.f32 %v1145_v27, %v1165_v43  ;;  %v1169_v3 = vsub.f32 %v1146_v30, %v1165_v43  ;;  %v1188_v23 = vld [vmem:[#allocation4] sm:$0xff] }
 0x3b8   : > { %v1278_v43 = vld [vmem:[%s2676_s12] sm:$0xff] (!%p1575_p4) }
 0x3b9   : > { %v1170_v47 = vmul.f32 1.442695, %v1166_v44  ;;  %v1172_v48 = vmul.f32 1.442695, %v1167_v45  ;;  %v1174_v49 = vmul.f32 1.442695, %v1168_v46 }
 0x3ba   : > { %v1176_v50 = vmul.f32 1.442695, %v1169_v3 }
 0x3bb   : > { %1841 = vpow2.f32 %v1170_v47 }
 0x3bc   : > { %1843 = vpow2.f32 %v1172_v48 }
 0x3bd   : > { %1845 = vpow2.f32 %v1174_v49 }
 0x3be   : > { %1847 = vpow2.f32 %v1176_v50 }
 0x3bf   : > { %1849 = vpow2.f32 %v1155_v8 }
 0x3c5   : > { %v1842_v54 = vpop.eup %1841 }
 0x3c6   : > { %v1844_v56 = vpop.eup %1843  ;;  %v1198_v57 = vmul.f32 %v1842_v54, %v467_v51  ;;  %v1202_v59 = vmul.f32 %v1842_v54, %v471_v9 }
 0x3c7   : > { %v1846_v60 = vpop.eup %1845  ;;  %v1180_v61 = vadd.f32 %v1844_v56, %v1842_v54  ;;  %v1199_v63 = vmul.f32 %v1844_v56, %v468_v52  ;;  %v1203_v0 = vmul.f32 %v1844_v56, %v472_v53 }
 0x3c8   : > { %v1848_v1 = vpop.eup %1847  ;;  %v1200_v4 = vmul.f32 %v1846_v60, %v469_v55  ;;  %v1204_v5 = vmul.f32 %v1846_v60, %v473_v58 }
 0x3c9   : > { %v1181_v2 = vadd.f32 %v1846_v60, %v1180_v61  ;;  %v1206_v6 = vadd.f32 %v1199_v63, %v1198_v57  ;;  %v1211_v11 = vadd.f32 %v1203_v0, %v1202_v59  ;;  %v1201_v13 = vmul.f32 %v1848_v1, %v470_v62  ;;  %v1850_v19 = vpop.eup %1849 }
 0x3ca   : > { %v1205_v17 = vmul.f32 %v1848_v1, %v474_v7  ;;  %v1194_v22 = vrot.slane %v1850_v19, %v2790_v41  ;;  %v1179_v10 = vmul.f32 %v1850_v19, %v1178_v21 }
 0x3cb   : > { %v1182_v12 = vadd.f32 %v1848_v1, %v1181_v2  ;;  %v1207_v14 = vadd.f32 %v1206_v6, %v1200_v4  ;;  %v1212_v15 = vadd.f32 %v1211_v11, %v1204_v5 }
 0x3cc   : > { %v1196_v27 = vmul.f32 %v1194_v22, %v1188_v23  ;;  %v1197_v30 = vmul.f32 %v1194_v22, %v1189_v25 }
 0x3cd   : > { %1183 = vadd.xlane.f32.xlu0 %v1182_v12  ;;  %v1208_v16 = vadd.f32 %v1207_v14, %v1201_v13  ;;  %v1213_v18 = vadd.f32 %v1212_v15, %v1205_v17 }
 0x3cf   : > { %1209 = vadd.xlane.f32.xlu1 %v1208_v16 }
 0x3d1   : > { %1214 = vadd.xlane.f32.xlu0 %v1213_v18 }
 0x3e7   : > { %1282 = vperm.xlu0 (!%p1575_p4), %1851, %v1279_v32  }
 0x45a   : > { %v1184_v24 = vpop.xlane.xlu0 %1183 }
 0x45b   : > { %v1185_v26 = vadd.f32 %v1184_v24, %v1179_v10  ;;  %1262 = sbr.rel (%p1575_p4) target bundleno = 1269 (0x4f5), region = 76 }
 0x45c   : > { %v1210_v28 = vpop.xlane.xlu1 %1209 }
 0x45d   : > { %1187 = vst.msk [vmem:[#allocation3] sm:$0x1] %vm1186_vm14, %v1185_v26  ;;  %v1216_v29 = vadd.f32 %v1210_v28, %v1196_v27 }
 0x45e   : > { %v1215_v20 = vpop.xlane.xlu0 %1214 }
 0x45f   : > { %1219 = vst.msk [vmem:[#allocation4] sm:$0xff] %vm1218_vm15, %v1216_v29  ;;  %v1217_v31 = vadd.f32 %v1215_v20, %v1197_v30 }
 0x461   : > { %1220 = vst.msk [vmem:[#allocation4 + $0x8] sm:$0xff] %vm1218_vm15, %v1217_v31 }
 0x464   : > { %v1263_v33 = vld [vmem:[#allocation3] sm:$0x1] }
 0x465   : > { %1852 = vrcp.f32 %v1263_v33 }
 0x466   : > { %v1266_v36 = vld [vmem:[#allocation4] sm:$0xff]  ;;  %v1283_v42 = vpop.permute.xlu0 %1282 }
 0x467   : > { %v1288_v44 = vrot.slane %v1283_v42, %v2790_v41 }
 0x468   : > { %v1267_v37 = vld [vmem:[#allocation4 + $0x8] sm:$0xff] }
 0x469   : > { %v1289_v45 = vsub.f32 %v1278_v43, %v1288_v44 }
 0x46b   : > { %v1290_v46 = vmul.f32 1.442695, %v1289_v45 }
 0x46d   : > { %1854 = vpow2.f32 %v1290_v46 }
 0x46f   : > { %v1853_v35 = vpop.eup %1852 }
 0x470   : > { %1293 = vperm.xlu0 %1851, %v1853_v35   ;;  %v1272_v38 = vrot.slane %v1853_v35, %v2790_v41 }
 0x472   : > { %v1274_v39 = vmul.f32 %v1272_v38, %v1266_v36  ;;  %v1275_v40 = vmul.f32 %v1272_v38, %v1267_v37 }
 0x474   : > { %1276 = vst.msk [vmem:[%s2674_s0] sm:$0xff] %vm1218_vm15, %v1274_v39  ;;  %1277 = vst.msk [vmem:[%s2674_s0 + $0x8] sm:$0xff] %vm1218_vm15, %v1275_v40 }
 0x477   : > { %v1855_v48 = vpop.eup %1854 }
 0x4ef   : > { %v1294_v3 = vpop.permute.xlu0 %1293 }
 0x4f0   : > { %v1299_v47 = vrot.slane %v1294_v3, %v2790_v41 }
 0x4f2   : > { %v1300_v49 = vmul.f32 %v1855_v48, %v1299_v47 }
 0x4f4   : > { %1301 = vst [vmem:[%s2676_s12] sm:$0xff] %v1300_v49 }
 0x4f5 PF: > { %s3005_s19 = sld [smem:[#allocation33_spill]]  ;;  %s3006_s14 = sld [smem:[#allocation42_spill]] }
 0x4f6   : > { %s3007_s29 = sld [smem:[#allocation45_spill]]  ;;  %s1321_s26 = sshll.u32 %s2674_s0, 4  ;;  %s2822_s26 = int_to_ptr.vmem [resolvable:$true] %s1321_s26 }
 0x4f7   : > { %s1303_s4 = scalar_lea.sflag [#allocation9], %s2655_s2  ;;  %s2040_s13 = scalar_lea.vmem %s2822_s26, 256 }
 0x4f8   : > { %p2041_p11 = scmp.ne.s32.totalorder %s2822_s26, %s2040_s13  ;;  %s2235_s8 = smov [#allocation18]  }
 0x4f9   : > { %s2044_s10 = sshll.u32 %s2235_s8, 4  ;;  %s2045_s10 = int_to_ptr.vmem [resolvable:$false] %s2044_s10 }
 0x4fa   : > { %s2046_s9 = scalar_lea.vmem %s2045_s10, 512  ;;  %p2047_p10 = scmp.lt.s32.totalorder %s2822_s26, %s2045_s10 }
 0x4fb   : > { %s1585_s30 = sshll.u32 %s3005_s19, 8  ;;  %p3008_p9 = scmp.ne.s32.totalorder %s3006_s14, 0 }
 0x4fc   : > { %s2819_s21 = scalar_lea.hbm %s3007_s29, %s1585_s30  ;;  %p2048_p7 = scmp.lt.s32.totalorder %s2046_s9, %s2040_s13 }
 0x4fd   : > { %p2042_p5 = pnand %p2041_p11, %p3008_p9 }
 0x4fe   : > { %p2049_p0 = por %p2048_p7, %p2047_p10 }
 0x4ff   : > { %p2043_p6 = pneg %p2042_p5 }
 0x501   : > { %p2050_p8 = pnand %p2049_p0, %p2043_p6 }
 0x503   : > { %2053 = shalt.err (!%p2050_p8)
}
 0x504   : > { %s2054_s0 = scalar_lea.hbm %s2819_s21, 256  ;;  %s2058_s15 = scalar_lea.hbm %s3007_s29, 512 }
 0x505   : > { %p2055_p12 = scmp.ne.s32.totalorder %s2819_s21, %s2054_s0  ;;  %p2059_p2 = scmp.lt.u32.totalorder %s2819_s21, %s3007_s29 }
 0x506   : > { %p2060_p13 = scmp.lt.u32.totalorder %s2058_s15, %s2054_s0  ;;  %p2062_p11 = scmp.lt.u32.totalorder %s2054_s0, %s2819_s21 }
 0x507   : > { %p2056_p3 = pnand %p2055_p12, %p3008_p9 }
 0x508   : > { %p2061_p4 = por %p2060_p13, %p2059_p2 }
 0x509   : > { %p2057_p1 = pneg %p2056_p3 }
 0x50a   : > { %p2063_p5 = por %p2062_p11, %p2061_p4 }
 0x50c   : > { %p2064_p6 = pnand %p2063_p5, %p2057_p1 }
 0x50e   : > { %2067 = shalt.err (!%p2064_p6)
}
 0x50f   : > { %s2236_s27 = smov 128   ;;  %s2237_s24 = smov 8  }
 0x510   : > { %1653 = dma.vmem_to_hbm [thread:$0]  (%p3008_p9), %s2822_s26, 256, %s2819_s21, %s1303_s4, %s2236_s27, %s2236_s27, %s2237_s24  }
 0x511   : > { %s1586_s30 = sshll.u32 %s3005_s19, 7  ;;  %s1338_s25 = sshll.u32 %s2676_s12, 4  ;;  %s1339_s25 = int_to_ptr.vmem [resolvable:$true] %s1338_s25 }
 0x512   : > { %s3009_s8 = sld [smem:[#allocation46_spill]]  ;;  %s1308_s9 = scalar_lea.sflag [#allocation20], %s2655_s2 }
 0x513   : > { %s2068_s0 = scalar_lea.vmem %s1339_s25, 128  ;;  %s2238_s11 = smov [#allocation19]  }
 0x514   : > { %p2069_p10 = scmp.ne.s32.totalorder %s1339_s25, %s2068_s0  ;;  %s2072_s28 = sshll.u32 %s2238_s11, 4  ;;  %s2073_s28 = int_to_ptr.vmem [resolvable:$false] %s2072_s28 }
 0x515   : > { %s2074_s15 = scalar_lea.vmem %s2073_s28, 256  ;;  %p2075_p8 = scmp.lt.s32.totalorder %s1339_s25, %s2073_s28 }
 0x516   : > { %p2070_p7 = pnand %p2069_p10, %p3008_p9  ;;  %p2076_p12 = scmp.lt.s32.totalorder %s2074_s15, %s2068_s0 }
 0x518   : > { %s2853_s10 = scalar_lea.hbm %s3009_s8, %s1586_s30  ;;  %p2071_p0 = pneg %p2070_p7 }
 0x519   : > { %p2077_p3 = por %p2076_p12, %p2075_p8 }
 0x51b   : > { %p2078_p1 = pnand %p2077_p3, %p2071_p0 }
 0x51d   : > { %2081 = shalt.err (!%p2078_p1)
}
 0x51e   : > { %s2082_s2 = scalar_lea.hbm %s2853_s10, 128  ;;  %s2086_s21 = scalar_lea.hbm %s3009_s8, 256 }
 0x51f   : > { %p2083_p2 = scmp.ne.s32.totalorder %s2853_s10, %s2082_s2  ;;  %p2087_p11 = scmp.lt.u32.totalorder %s2853_s10, %s3009_s8 }
 0x520   : > { %p2088_p5 = scmp.lt.u32.totalorder %s2086_s21, %s2082_s2  ;;  %p2090_p10 = scmp.lt.u32.totalorder %s2082_s2, %s2853_s10 }
 0x521   : > { %p2084_p13 = pnand %p2083_p2, %p3008_p9 }
 0x522   : > { %p2089_p6 = por %p2088_p5, %p2087_p11 }
 0x523   : > { %p2085_p4 = pneg %p2084_p13 }
 0x524   : > { %p2091_p7 = por %p2090_p10, %p2089_p6 }
 0x526   : > { %p2092_p0 = pnand %p2091_p7, %p2085_p4 }
 0x528   : > { %2095 = shalt.err (!%p2092_p0)
}
 0x529   : > { %1654 = dma.vmem_to_hbm [thread:$0]  (%p3008_p9), %s1339_s25, 128, %s2853_s10, %s1308_s9  }
 0x52a PF: > { %s3010_s7 = sld [smem:[#allocation34_spill]]  ;;  %s3011_s20 = sld [smem:[#allocation29_spill]] }
 0x52b   : > { %s3012_s27 = sld [smem:[#allocation37_spill]] }
 0x530   : > { %p1691_p8 = scmp.ge.s32.totalorder %s3010_s7, 2  ;;  %s1350_s24 = sand.u32 1, %s3011_s20  }
 0x531   : > { %p3013_p12 = scmp.ne.s32.totalorder %s3012_s27, 0  ;;  %s1351_s30 = scalar_lea.sflag [#allocation9], %s1350_s24 }
 0x533   : > { %p1678_p3 = pnand %p1691_p8, %p3013_p12 }
 0x535   : > { %2163 = dma.done.wait (!%p1678_p3), %s1351_s30, 256  }
 0x536   : > { %2165 = vsyncadd (!%p1678_p3), %s1351_s30, 4294967040  ;;  %s1360_s16 = scalar_lea.sflag [#allocation20], %s1350_s24 }
 0x537   : > { %2167 = dma.done.wait (!%p1678_p3), %s1360_s16, 128  }
 0x538   : > { %2169 = vsyncadd (!%p1678_p3), %s1360_s16, 4294967168  ;;  %s37_s24 = sadd.s32 1, %s3010_s7   ;;  %s3014_s15 = sld [smem:[#allocation30_spill]] }
 0x539   : > { %p34_p1 = scmp.ge.s32.totalorder %s37_s24, 6   ;;  %s3015_s14 = sld [smem:[#allocation40_spill]] }
 0x53a   : > { %s3016_s25 = sld [smem:[#allocation31_spill]]  ;;  %s3017_s19 = sld [smem:[#allocation41_spill]] }
 0x53b   : > { %s3018_s13 = sld [smem:[#allocation38_spill]]  ;;  %s3019_s10 = sld [smem:[#allocation39_spill]] }
 0x53c   : > { %s3020_s16 = smov %s2180_s17  ;;  %s3022_s0 = smov %s2188_s18 }
 0x53d   : > { %s3024_s20 = smov %s2204_s22  ;;  %s3025_s21 = smov %s2208_s23 }
 0x53e   :  { %36 = sbr.rel (!%p34_p1) target bundleno = 28 (0x1c), region = 151 }
 0x53f   : > { %s3021_s17 = smov %s3015_s14 }
 0x540   : > { %s3023_s18 = smov %s3016_s25 }
 0x541   : > { %s3026_s22 = smov %s3018_s13  ;;  %s3027_s23 = smov %s3019_s10 }
 0x545   :  { %1365 = vsyncpa [#allocation8], 1 }
 0x546   :  { %1367 = vsyncpa [#allocation8 + $0x1], 1 }
 0x547   :  { %1368 = vsyncpa [#allocation11], 1 }
 0x548   :  { %1370 = vsyncpa [#allocation11 + $0x1], 1 }
 0x549   :  { %1371 = vsyncpa [#allocation14], 1 }
 0x54a   :  { %1372 = vsyncpa [#allocation17], 1 }
 0x54b   :  { %1373 = vsyncpa [#allocation9], 1 }
 0x54c   :  { %1375 = vsyncpa [#allocation9 + $0x1], 1 }
 0x54d   :  { %1376 = vsyncpa [#allocation20], 1 }
 0x54e   :  { %1378 = vsyncpa [#allocation20 + $0x1], 1 }

</bundles_post_ra>
